<compile_context>
chip_gen: v7x
topology: tpu7x:2x2x1
jax: 0.10.0
libtpu: 0.0.40
codegen_flags: <defaults>
</compile_context>

<pallas_src>
import functools

import jax
import jax.numpy as jnp
from jax.experimental import pallas as pl
from jax.experimental.pallas import tpu as pltpu

HIDDEN = 128     # hidden width of the MLP
HEAD_PAD = 128   # lane-dense packed head width: [actor lanes | critic lane | zeros]
D_PAD = 8        # fc1 contraction dim padded 4 -> 8 (sublane-packed bf16 MXU operand)


def _round_up(n, m):
    return ((n + m - 1) // m) * m


def _tensorcores_per_chip():
    """Generation-aware TensorCore count: v7x has 2 TCs/chip, v5e/v6e have 1."""
    try:
        kind = jax.devices()[0].device_kind.lower()
    except Exception:
        return 1
    return 2 if "v7" in kind else 1


def actor_critic_kernel(x_ref, w1_ref, b1_ref, w2_ref, b2_ref, wh_ref, bh_ref,
                        out_ref, *, n_actions):
    # ---- fc1 + ReLU: tiny bf16 MXU matmul (K padded to 8), f32 accumulation.
    h1 = jnp.dot(x_ref[...], w1_ref[...],
                 preferred_element_type=jnp.float32) + b1_ref[...]
    h1 = jnp.maximum(h1, 0.0)                          # (tb, H) f32

    # ---- fc2 + ReLU: bf16 MXU matmul, f32 accumulation.
    h2 = jnp.dot(h1.astype(w2_ref.dtype), w2_ref[...],
                 preferred_element_type=jnp.float32) + b2_ref[...]
    h2 = jnp.maximum(h2, 0.0)                          # (tb, H) f32

    # ---- fused actor+critic head: one lane-dense matmul.
    logits = jnp.dot(h2.astype(wh_ref.dtype), wh_ref[...],
                     preferred_element_type=jnp.float32) + bh_ref[...]
    # logits: (tb, HP); lanes [0, n_actions) = actor logits,
    #                   lane n_actions      = critic value.

    lane = jax.lax.broadcasted_iota(jnp.int32, logits.shape, 1)
    actor_mask = lane < n_actions

    # Masked, max-stabilized softmax over the actor lanes only.
    neg_big = jnp.float32(-1e30)
    masked = jnp.where(actor_mask, logits, neg_big)
    m = jnp.max(masked, axis=-1, keepdims=True)
    e = jnp.where(actor_mask, jnp.exp(masked - m), 0.0)
    denom = jnp.sum(e, axis=-1, keepdims=True)
    # Exact reciprocal (still EUP): keeps the distribution properly normalized
    # for downstream categorical sampling / log-prob computation.
    probs = e * pl.reciprocal(denom)

    # Assemble one lane-dense output tile: probs | critic | zeros.
    out = jnp.where(actor_mask, probs,
                    jnp.where(lane == n_actions, logits, 0.0))
    out_ref[...] = out.astype(out_ref.dtype)


def actor_critic_forward_packed(x, params, *, n_actions, max_tile=2048,
                                num_cores=None):
    """Fused ActorCritic forward.

    x: (B, input_shape) f32. Returns the packed lane-dense (B_pad, HEAD_PAD)
    bf16 buffer:
        lanes [0, n_actions)        -> actor softmax probabilities
        lane  n_actions             -> critic value
        lanes (n_actions, HEAD_PAD) -> zero padding
    Keep it packed and slice only at the final consumer (see `unpack_outputs`)
    to avoid extra XLA slice ops and HBM round trips.
    """
    w1, b1, w2, b2, wh, bh = params
    B, D = x.shape
    Dp, H = w1.shape          # Dp = D_PAD
    HP = wh.shape[1]          # HEAD_PAD

    if num_cores is None:
        num_cores = _tensorcores_per_chip()

    # Generation-aware batch tiling:
    #   * single tile on single-TC v5e/v6e (no extra grid-step overhead),
    #   * grid a multiple of num_cores on dual-TC v7x so both cores get work,
    #   * tile capped at `max_tile` rows so each step still moves 100s of KB
    #     when B grows.
    num_tiles = max(num_cores, pl.cdiv(B, max_tile))
    num_tiles = _round_up(num_tiles, num_cores)
    tb = _round_up(pl.cdiv(B, num_tiles), 16)   # multiple of 16: bf16 sublanes
    B_pad = tb * num_tiles
    grid = (num_tiles,)

    # Pad batch + obs dim (4 -> D_PAD) and cast to bf16 (MXU operand) in one op.
    x_p = jnp.pad(x, ((0, B_pad - B), (0, Dp - D))).astype(jnp.bfloat16)

    kernel = functools.partial(actor_critic_kernel, n_actions=n_actions)

    flops = 2 * B_pad * (Dp * H + H * H + H * HP)
    transcendentals = B_pad * (HP + 1)
    bytes_accessed = int(x_p.nbytes + w1.nbytes + b1.nbytes + w2.nbytes +
                         b2.nbytes + wh.nbytes + bh.nbytes + B_pad * HP * 2)

    out = pl.pallas_call(
        kernel,
        out_shape=jax.ShapeDtypeStruct((B_pad, HP), jnp.bfloat16),
        grid=grid,
        in_specs=[
            pl.BlockSpec((tb, Dp), lambda i: (i, 0)),   # x: streamed per tile
            # Weights/biases: constant index_map -> VMEM-resident across steps.
            pl.BlockSpec((Dp, H), lambda i: (0, 0)),
            pl.BlockSpec((1, H), lambda i: (0, 0)),
            pl.BlockSpec((H, H), lambda i: (0, 0)),
            pl.BlockSpec((1, H), lambda i: (0, 0)),
            pl.BlockSpec((H, HP), lambda i: (0, 0)),
            pl.BlockSpec((1, HP), lambda i: (0, 0)),
        ],
        out_specs=pl.BlockSpec((tb, HP), lambda i: (i, 0)),
        compiler_params=pltpu.CompilerParams(
            dimension_semantics=("parallel",)),
        cost_estimate=pl.CostEstimate(flops=flops,
                                      transcendentals=transcendentals,
                                      bytes_accessed=bytes_accessed),
    )(x_p, w1, b1, w2, b2, wh, bh)
    return out


def unpack_outputs(packed, batch, n_actions):
    """Slice the packed kernel output (do this only at the final consumer)."""
    actor_probs = packed[:batch, :n_actions].astype(jnp.float32)
    critic_value = packed[:batch, n_actions:n_actions + 1].astype(jnp.float32)
    return actor_probs, critic_value


def init_params(key, input_shape, n_actions, hidden=HIDDEN):
    """PyTorch-style nn.Linear init (uniform +/- 1/sqrt(fan_in)).
    Weights stored as (in_features, out_features); biases as (1, out_features)."""
    def linear(key, fan_in, fan_out):
        kw, kb = jax.random.split(key)
        bound = 1.0 / (fan_in ** 0.5)
        w = jax.random.uniform(kw, (fan_in, fan_out), jnp.float32, -bound, bound)
        b = jax.random.uniform(kb, (1, fan_out), jnp.float32, -bound, bound)
        return w, b

    k1, k2, k3, k4 = jax.random.split(key, 4)
    w1, b1 = linear(k1, input_shape, hidden)
    w2, b2 = linear(k2, hidden, hidden)
    wa, ba = linear(k3, hidden, n_actions)
    wc, bc = linear(k4, hidden, 1)
    return (w1, b1, w2, b2, wa, ba, wc, bc)


def pack_params(raw, n_actions, hidden=HIDDEN, d_pad=D_PAD, head_pad=HEAD_PAD):
    """Pad fc1 to K=D_PAD, fuse actor+critic heads into one lane-dense weight,
    and cast all MXU operands to bf16. Biases stay f32."""
    w1, b1, w2, b2, wa, ba, wc, bc = raw
    d_in = w1.shape[0]

    w1p = jnp.zeros((d_pad, hidden), jnp.float32).at[:d_in, :].set(w1)

    wh = jnp.zeros((hidden, head_pad), jnp.float32)
    wh = wh.at[:, :n_actions].set(wa).at[:, n_actions:n_actions + 1].set(wc)
    bh = jnp.zeros((1, head_pad), jnp.float32)
    bh = bh.at[:, :n_actions].set(ba).at[:, n_actions:n_actions + 1].set(bc)

    # TODO(synk): if the critic feeds f32 GAE/TD targets during training,
    # compute the critic column in f32 instead of the bf16 fused head.
    return (w1p.astype(jnp.bfloat16), b1,
            w2.astype(jnp.bfloat16), b2,
            wh.astype(jnp.bfloat16), bh)


if __name__ == "__main__":
    # CartPole-v1: observation dim = 4, n_actions = 2.
    INPUT_SHAPE = 4
    N_ACTIONS = 2
    BATCH = 256          # vectorized envs

    key = jax.random.PRNGKey(0)
    kx, kp = jax.random.split(key)

    x = jax.random.normal(kx, (BATCH, INPUT_SHAPE), jnp.float32)
    raw = init_params(kp, INPUT_SHAPE, N_ACTIONS)
    params = pack_params(raw, N_ACTIONS)

    packed = actor_critic_forward_packed(x, params, n_actions=N_ACTIONS)
    jax.block_until_ready(packed)

    # Final consumer: single unpack/slice of the packed buffer.
    actor_probs, critic_value = unpack_outputs(packed, BATCH, N_ACTIONS)
    jax.block_until_ready((actor_probs, critic_value))

    # Pure-JAX f32 reference (original module semantics).
    w1, b1, w2, b2, wa, ba, wc, bc = raw
    h1 = jnp.maximum(x @ w1 + b1, 0.0)
    h2 = jnp.maximum(h1 @ w2 + b2, 0.0)
    ref_actor = jax.nn.softmax(h2 @ wa + ba, axis=-1)
    ref_critic = h2 @ wc + bc

    assert actor_probs.shape == (BATCH, N_ACTIONS)
    assert critic_value.shape == (BATCH, 1)
    # Exact reciprocal in-kernel; residual error is bf16 output quantization.
    assert jnp.allclose(jnp.sum(actor_probs, axis=-1), 1.0, atol=1e-2)
    # bf16 matmul operands + bf16 packed output -> loosened tolerance.
    assert jnp.allclose(actor_probs, ref_actor, atol=2e-2, rtol=2e-2)
    assert jnp.allclose(critic_value, ref_critic, atol=2e-2, rtol=2e-2)

    print("KERNEL_OK")
</pallas_src>

<mosaic_0001>
module attributes {stable_mosaic.version = 11 : i64} {
  func.func @actor_critic_kernel(%arg0: i32, %arg1: memref<256x8xbf16, #tpu.memory_space<vmem>>, %arg2: memref<8x128xbf16, #tpu.memory_space<vmem>>, %arg3: memref<1x128xf32, #tpu.memory_space<vmem>>, %arg4: memref<128x128xbf16, #tpu.memory_space<vmem>>, %arg5: memref<1x128xf32, #tpu.memory_space<vmem>>, %arg6: memref<128x128xbf16, #tpu.memory_space<vmem>>, %arg7: memref<1x128xf32, #tpu.memory_space<vmem>>, %arg8: memref<256x128xbf16, #tpu.memory_space<vmem>>) attributes {dimension_semantics = [#tpu.dimension_semantics<parallel>], iteration_bounds = array<i64: 1>, scalar_prefetch = 0 : i64, scratch_operands = 0 : i64, tpu.core_type = #tpu.core_type<tc>, window_params = [{transform_indices = @transform_0, window_bounds = array<i64: 256, 8>}, {pipeline_mode = #tpu.pipeline_mode<synchronous>, transform_indices = @transform_1, window_bounds = array<i64: 8, 128>}, {pipeline_mode = #tpu.pipeline_mode<synchronous>, transform_indices = @transform_2, window_bounds = array<i64: 1, 128>}, {pipeline_mode = #tpu.pipeline_mode<synchronous>, transform_indices = @transform_3, window_bounds = array<i64: 128, 128>}, {pipeline_mode = #tpu.pipeline_mode<synchronous>, transform_indices = @transform_4, window_bounds = array<i64: 1, 128>}, {pipeline_mode = #tpu.pipeline_mode<synchronous>, transform_indices = @transform_5, window_bounds = array<i64: 128, 128>}, {pipeline_mode = #tpu.pipeline_mode<synchronous>, transform_indices = @transform_6, window_bounds = array<i64: 1, 128>}, {transform_indices = @transform_7, window_bounds = array<i64: 256, 128>}]} {
    %c0 = arith.constant 0 : index
    %c0_0 = arith.constant 0 : index
    %0 = vector.load %arg1[%c0, %c0_0] : memref<256x8xbf16, #tpu.memory_space<vmem>>, vector<256x8xbf16>
    %c0_1 = arith.constant 0 : index
    %c0_2 = arith.constant 0 : index
    %1 = vector.load %arg2[%c0_1, %c0_2] : memref<8x128xbf16, #tpu.memory_space<vmem>>, vector<8x128xbf16>
    %cst = arith.constant dense<0.000000e+00> : vector<256x128xf32>
    %2 = tpu.matmul %0, %1, %cst {dimension_numbers = #tpu.dot_dimension_numbers<[1], [0], [0], [1], [0, 0, 1, 1], [], []>} : vector<256x8xbf16>, vector<8x128xbf16>, vector<256x128xf32> -> vector<256x128xf32>
    %c0_3 = arith.constant 0 : index
    %c0_4 = arith.constant 0 : index
    %3 = vector.load %arg3[%c0_3, %c0_4] : memref<1x128xf32, #tpu.memory_space<vmem>>, vector<1x128xf32>
    %4 = vector.broadcast %3 : vector<1x128xf32> to vector<256x128xf32>
    %5 = arith.addf %2, %4 : vector<256x128xf32>
    %cst_5 = arith.constant 0.000000e+00 : f32
    %6 = vector.broadcast %cst_5 : f32 to vector<256x128xf32>
    %7 = arith.maximumf %5, %6 : vector<256x128xf32>
    %8 = arith.truncf %7 : vector<256x128xf32> to vector<256x128xbf16>
    %c0_6 = arith.constant 0 : index
    %c0_7 = arith.constant 0 : index
    %9 = vector.load %arg4[%c0_6, %c0_7] : memref<128x128xbf16, #tpu.memory_space<vmem>>, vector<128x128xbf16>
    %cst_8 = arith.constant dense<0.000000e+00> : vector<256x128xf32>
    %10 = tpu.matmul %8, %9, %cst_8 {dimension_numbers = #tpu.dot_dimension_numbers<[1], [0], [0], [1], [0, 0, 1, 1], [], []>} : vector<256x128xbf16>, vector<128x128xbf16>, vector<256x128xf32> -> vector<256x128xf32>
    %c0_9 = arith.constant 0 : index
    %c0_10 = arith.constant 0 : index
    %11 = vector.load %arg5[%c0_9, %c0_10] : memref<1x128xf32, #tpu.memory_space<vmem>>, vector<1x128xf32>
    %12 = vector.broadcast %11 : vector<1x128xf32> to vector<256x128xf32>
    %13 = arith.addf %10, %12 : vector<256x128xf32>
    %cst_11 = arith.constant 0.000000e+00 : f32
    %14 = vector.broadcast %cst_11 : f32 to vector<256x128xf32>
    %15 = arith.maximumf %13, %14 : vector<256x128xf32>
    %16 = arith.truncf %15 : vector<256x128xf32> to vector<256x128xbf16>
    %c0_12 = arith.constant 0 : index
    %c0_13 = arith.constant 0 : index
    %17 = vector.load %arg6[%c0_12, %c0_13] : memref<128x128xbf16, #tpu.memory_space<vmem>>, vector<128x128xbf16>
    %cst_14 = arith.constant dense<0.000000e+00> : vector<256x128xf32>
    %18 = tpu.matmul %16, %17, %cst_14 {dimension_numbers = #tpu.dot_dimension_numbers<[1], [0], [0], [1], [0, 0, 1, 1], [], []>} : vector<256x128xbf16>, vector<128x128xbf16>, vector<256x128xf32> -> vector<256x128xf32>
    %c0_15 = arith.constant 0 : index
    %c0_16 = arith.constant 0 : index
    %19 = vector.load %arg7[%c0_15, %c0_16] : memref<1x128xf32, #tpu.memory_space<vmem>>, vector<1x128xf32>
    %20 = vector.broadcast %19 : vector<1x128xf32> to vector<256x128xf32>
    %21 = arith.addf %18, %20 : vector<256x128xf32>
    %22 = tpu.iota {dimensions = array<i32: 1>} : vector<256x128xi32>
    %c2_i32 = arith.constant 2 : i32
    %23 = vector.broadcast %c2_i32 : i32 to vector<256x128xi32>
    %24 = arith.cmpi slt, %22, %23 : vector<256x128xi32>
    %cst_17 = arith.constant -1.000000e+30 : f32
    %25 = vector.broadcast %cst_17 : f32 to vector<256x128xf32>
    %26 = arith.select %24, %21, %25 : vector<256x128xi1>, vector<256x128xf32>
    %cst_18 = arith.constant dense<0xFF800000> : vector<256xf32>
    %27 = vector.multi_reduction <maximumf>, %26, %cst_18 [1] : vector<256x128xf32> to vector<256xf32>
    %28 = vector.shape_cast %27 : vector<256xf32> to vector<256x1xf32>
    %29 = vector.broadcast %28 : vector<256x1xf32> to vector<256x128xf32>
    %30 = arith.subf %26, %29 : vector<256x128xf32>
    %31 = math.exp %30 : vector<256x128xf32>
    %cst_19 = arith.constant 0.000000e+00 : f32
    %32 = vector.broadcast %cst_19 : f32 to vector<256x128xf32>
    %33 = arith.select %24, %31, %32 : vector<256x128xi1>, vector<256x128xf32>
    %cst_20 = arith.constant dense<0.000000e+00> : vector<256xf32>
    %34 = vector.multi_reduction <add>, %33, %cst_20 [1] : vector<256x128xf32> to vector<256xf32>
    %35 = vector.shape_cast %34 : vector<256xf32> to vector<256x1xf32>
    %36 = tpu.reciprocal %35 : vector<256x1xf32> -> vector<256x1xf32>
    %37 = vector.broadcast %36 : vector<256x1xf32> to vector<256x128xf32>
    %38 = arith.mulf %33, %37 : vector<256x128xf32>
    %c2_i32_21 = arith.constant 2 : i32
    %39 = vector.broadcast %c2_i32_21 : i32 to vector<256x128xi32>
    %40 = arith.cmpi eq, %22, %39 : vector<256x128xi32>
    %cst_22 = arith.constant 0.000000e+00 : f32
    %41 = vector.broadcast %cst_22 : f32 to vector<256x128xf32>
    %42 = arith.select %40, %21, %41 : vector<256x128xi1>, vector<256x128xf32>
    %43 = arith.select %24, %38, %42 : vector<256x128xi1>, vector<256x128xf32>
    %44 = arith.truncf %43 : vector<256x128xf32> to vector<256x128xbf16>
    %c0_23 = arith.constant 0 : index
    %c0_24 = arith.constant 0 : index
    %45 = vector.load %arg8[%c0_23, %c0_24] : memref<256x128xbf16, #tpu.memory_space<vmem>>, vector<256x128xbf16>
    tpu.vector_store %arg8[%c0_23, %c0_24], %44 {strides = array<i32>} : memref<256x128xbf16, #tpu.memory_space<vmem>>, vector<256x128xbf16>,
    return
  }
  func.func @transform_0(%arg0: i32) -> (i32, i32) {
    %c0_i32 = arith.constant 0 : i32
    %c0_i32_0 = arith.constant 0 : i32
    return %arg0, %c0_i32 : i32, i32
  }
  func.func @transform_1(%arg0: i32) -> (i32, i32) {
    %c0_i32 = arith.constant 0 : i32
    %c0_i32_0 = arith.constant 0 : i32
    %c0_i32_1 = arith.constant 0 : i32
    return %c0_i32, %c0_i32_0 : i32, i32
  }
  func.func @transform_2(%arg0: i32) -> (i32, i32) {
    %c0_i32 = arith.constant 0 : i32
    %c0_i32_0 = arith.constant 0 : i32
    %c0_i32_1 = arith.constant 0 : i32
    return %c0_i32, %c0_i32_0 : i32, i32
  }
  func.func @transform_3(%arg0: i32) -> (i32, i32) {
    %c0_i32 = arith.constant 0 : i32
    %c0_i32_0 = arith.constant 0 : i32
    %c0_i32_1 = arith.constant 0 : i32
    return %c0_i32, %c0_i32_0 : i32, i32
  }
  func.func @transform_4(%arg0: i32) -> (i32, i32) {
    %c0_i32 = arith.constant 0 : i32
    %c0_i32_0 = arith.constant 0 : i32
    %c0_i32_1 = arith.constant 0 : i32
    return %c0_i32, %c0_i32_0 : i32, i32
  }
  func.func @transform_5(%arg0: i32) -> (i32, i32) {
    %c0_i32 = arith.constant 0 : i32
    %c0_i32_0 = arith.constant 0 : i32
    %c0_i32_1 = arith.constant 0 : i32
    return %c0_i32, %c0_i32_0 : i32, i32
  }
  func.func @transform_6(%arg0: i32) -> (i32, i32) {
    %c0_i32 = arith.constant 0 : i32
    %c0_i32_0 = arith.constant 0 : i32
    %c0_i32_1 = arith.constant 0 : i32
    return %c0_i32, %c0_i32_0 : i32, i32
  }
  func.func @transform_7(%arg0: i32) -> (i32, i32) {
    %c0_i32 = arith.constant 0 : i32
    %c0_i32_0 = arith.constant 0 : i32
    return %arg0, %c0_i32 : i32, i32
  }
}

</mosaic_0001>

<bundles_post_ra>
// kernel: tpu_custom_call.1
= control target key start
LH: loop header
LB: loop body
LE: loop exit
PB: predicated region body
PF: predicated region fallthrough
CT: control target
= control target key end

     0   :  { %vm197_vm0 = vcmask 1043456   ;;  %vm148_vm1 = vcmask 64512   ;;  %s3013_s0 = inlined_call_operand.vmem [shape: bf16[256,8], index: 0, kind: input, shape index: {}]   ;;  %s3014_s1 = inlined_call_operand.vmem [shape: bf16[8,128], index: 1, kind: input, shape index: {}]   ;;  %s3015_s2 = inlined_call_operand.vmem [shape: f32[1,128], index: 2, kind: input, shape index: {}]   ;;  %s3016_s3 = inlined_call_operand.vmem [shape: bf16[128,128], index: 3, kind: input, shape index: {}]   ;;  %s3017_s4 = inlined_call_operand.vmem [shape: f32[1,128], index: 4, kind: input, shape index: {}]   ;;  %s3018_s5 = inlined_call_operand.vmem [shape: bf16[128,128], index: 5, kind: input, shape index: {}]   ;;  %s3019_s6 = inlined_call_operand.vmem [shape: f32[1,128], index: 6, kind: input, shape index: {}]   ;;  %s3020_s7 = inlined_call_operand.hbm [shape: bf16[256,128], index: 7, kind: output, shape index: {}]  }
   0x1   :  { %v60_v0 = vld [vmem:[%s3014_s1] sm:$0xf]  ;;  %v1931_v3 = vld [vmem:[%s3013_s0 + $0x8] sm:$0xff]   ;;  %v1932_v4 = vld [vmem:[%s3013_s0 + $0x10] sm:$0xff]  }
   0x2   :  { %v1930_v1 = vld [vmem:[%s3013_s0] sm:$0xff]   ;;  %1925 = vmatprep.subr.msk.bf16.mxu0 %vm197_vm0, %v60_v0  ;;  %v199_v2 = vsel %vm197_vm0, %v60_v0, 0  ;;  %1926 = vmatprep.subr.msk.bf16.mxu1 %vm197_vm0, %v60_v0  ;;  %v1933_v5 = vld [vmem:[%s3013_s0 + $0x18] sm:$0xff]   ;;  %v1939_v8 = vld [vmem:[%s3013_s0 + $0x48] sm:$0xff]  }
   0x3   :  { %1794 = vmatpush3.bf16.msra.mxu0 %v199_v2  ;;  %1795 = vmatprep.mubr.msk.bf16.mxu0 %vm148_vm1, %v1930_v1  ;;  %v1934_v6 = vld [vmem:[%s3013_s0 + $0x20] sm:$0xff]   ;;  %v1940_v9 = vld [vmem:[%s3013_s0 + $0x50] sm:$0xff]   ;;  %v1935_v10 = vld [vmem:[%s3013_s0 + $0x28] sm:$0xff]  }
   0x4   :  { %1924 = vmatpush3.bf16.msra.mxu1 %v199_v2  ;;  %v1938_v7 = vld [vmem:[%s3013_s0 + $0x40] sm:$0xff]   ;;  %v1941_v11 = vld [vmem:[%s3013_s0 + $0x58] sm:$0xff]   ;;  %v1936_v14 = vld [vmem:[%s3013_s0 + $0x30] sm:$0xff]  }
   0x5   :  { %1811 = vmatprep.mubr.msk.bf16.mxu1 %vm148_vm1, %v1938_v7  ;;  %v1942_v12 = vld [vmem:[%s3013_s0 + $0x60] sm:$0xff]   ;;  %v1947_v15 = vld [vmem:[%s3016_s3 + $0x8] sm:$0xff]   ;;  %v1948_v17 = vld [vmem:[%s3016_s3 + $0x10] sm:$0xff]  }
   0x6   :  { %1796 = vmatmul.mubr.msk.bf16.vlgmr.msra.gmra.mrb[0].mxu0 %vm148_vm1, %v1931_v3  ;;  %v1946_v13 = vld [vmem:[%s3016_s3] sm:$0xff]   ;;  %v1943_v16 = vld [vmem:[%s3013_s0 + $0x68] sm:$0xff]   ;;  %v1937_v18 = vld [vmem:[%s3013_s0 + $0x38] sm:$0xff]  }
   0x7   :  { %1799 = vmatprep.mubr.msk.bf16.mxu0 %vm148_vm1, %v1932_v4  ;;  %1812 = vmatmul.mubr.msk.bf16.vlgmr.msra.gmra.mrb[0].mxu1 %vm148_vm1, %v1939_v8  ;;  %v1944_v19 = vld [vmem:[%s3013_s0 + $0x70] sm:$0xff]   ;;  %v1949_v20 = vld [vmem:[%s3016_s3 + $0x18] sm:$0xff]  }
   0x8   :  { %1815 = vmatprep.mubr.msk.bf16.mxu1 %vm148_vm1, %v1940_v9  ;;  %1827 = vmatprep.subr.bf16.mxu1 %v1946_v13 }
   0x9   :  { %1828 = vmatpush3.bf16.msra.mxu1 %v1946_v13 }
   0xa   :  { %1829 = vmatprep.subr.bf16.mxu1 %v1947_v15 }
   0xd   :  { %1830 = vmatpush3.bf16.msra.mxu1 %v1947_v15 }
   0xe   :  { %1800 = vmatmul.mubr.msk.bf16.gmra.mrb[4].mxu0 %vm148_vm1, %v1933_v5  ;;  %1831 = vmatprep.subr.bf16.mxu1 %v1948_v17 }
   0xf   :  { %1803 = vmatprep.mubr.msk.bf16.mxu0 %vm148_vm1, %v1934_v6  ;;  %1816 = vmatmul.mubr.msk.bf16.gmra.mrb[4].mxu1 %vm148_vm1, %v1941_v11 }
  0x10   :  { %1819 = vmatprep.mubr.msk.bf16.mxu1 %vm148_vm1, %v1942_v12 }
  0x16   :  { %1804 = vmatmul.mubr.msk.bf16.gmra.mrb[8].mxu0 %vm148_vm1, %v1935_v10 }
  0x17   :  { %1807 = vmatprep.mubr.msk.bf16.mxu0 %vm148_vm1, %v1936_v14  ;;  %1820 = vmatmul.mubr.msk.bf16.gmra.mrb[8].mxu1 %vm148_vm1, %v1943_v16 }
  0x18   :  { %1823 = vmatprep.mubr.msk.bf16.mxu1 %vm148_vm1, %v1944_v19 }
  0x1e   :  { %1808 = vmatmul.mubr.msk.bf16.gmra.mrb[12].mxu0 %vm148_vm1, %v1937_v18 }
  0x1f   :  { %12 = vsyncpa [#allocation3], 0  ;;  %1832 = vmatpush3.bf16.msra.mxu1 %v1948_v17  ;;  %v1950_v21 = vld [vmem:[%s3016_s3 + $0x20] sm:$0xff]   ;;  %v1945_v22 = vld [vmem:[%s3013_s0 + $0x78] sm:$0xff]  }
  0x20   :  { %1833 = vmatprep.subr.bf16.mxu1 %v1949_v20  ;;  %v1951_v23 = vld [vmem:[%s3016_s3 + $0x28] sm:$0xff]   ;;  %1824 = vmatmul.mubr.msk.bf16.gmra.mrb[12].mxu1 %vm148_vm1, %v1945_v22  ;;  %v1952_v24 = vld [vmem:[%s3016_s3 + $0x30] sm:$0xff]   ;;  %v1953_v25 = vld [vmem:[%s3016_s3 + $0x38] sm:$0xff]  }
  0x21   :  { %v1954_v26 = vld [vmem:[%s3018_s5] sm:$0xff]   ;;  %v1955_v27 = vld [vmem:[%s3018_s5 + $0x8] sm:$0xff]   ;;  %v1956_v28 = vld [vmem:[%s3018_s5 + $0x10] sm:$0xff]  }
  0x22   :  { %1875 = vmatprep.subr.bf16.mxu0 %v1954_v26  ;;  %v1957_v29 = vld [vmem:[%s3018_s5 + $0x18] sm:$0xff]   ;;  %v1958_v30 = vld [vmem:[%s3018_s5 + $0x20] sm:$0xff]   ;;  %v1959_v31 = vld [vmem:[%s3018_s5 + $0x28] sm:$0xff]  }
  0x23   :  { %1834 = vmatpush3.bf16.msra.mxu1 %v1949_v20  ;;  %1876 = vmatpush3.bf16.msra.mxu0 %v1954_v26  ;;  %v2269_v32 = vld [vmem:[%s3015_s2] ss:$0 sm:$0xff] }
  0x24   :  { %1835 = vmatprep.subr.bf16.mxu1 %v1950_v21  ;;  %1877 = vmatprep.subr.bf16.mxu0 %v1955_v27 }
  0x27   :  { %1836 = vmatpush3.bf16.msra.mxu1 %v1950_v21  ;;  %1878 = vmatpush3.bf16.msra.mxu0 %v1955_v27 }
  0x28   :  { %1837 = vmatprep.subr.bf16.mxu1 %v1951_v23  ;;  %1879 = vmatprep.subr.bf16.mxu0 %v1956_v28 }
  0x2b   :  { %1838 = vmatpush3.bf16.msra.mxu1 %v1951_v23  ;;  %1880 = vmatpush3.bf16.msra.mxu0 %v1956_v28 }
  0x2c   :  { %1839 = vmatprep.subr.bf16.mxu1 %v1952_v24  ;;  %1881 = vmatprep.subr.bf16.mxu0 %v1957_v29 }
  0x2f   :  { %1840 = vmatpush3.bf16.msra.mxu1 %v1952_v24  ;;  %1882 = vmatpush3.bf16.msra.mxu0 %v1957_v29 }
  0x30   :  { %1841 = vmatprep.subr.bf16.mxu1 %v1953_v25  ;;  %1883 = vmatprep.subr.bf16.mxu0 %v1958_v30 }
  0x33   :  { %1842 = vmatpush3.bf16.msra.mxu1 %v1953_v25  ;;  %1884 = vmatpush3.bf16.msra.mxu0 %v1958_v30 }
  0x34   :  { %1885 = vmatprep.subr.bf16.mxu0 %v1959_v31 }
  0x37   :  { %1886 = vmatpush3.bf16.msra.mxu0 %v1959_v31 }
  0xd9   :  { %v1797_v33 = vpop.f32.mrb[0].mxu0 }
  0xda   :  { %v244_v34 = vadd.f32 %v1797_v33, %v2269_v32  ;;  %v235_v35 = vpop.f32.mrb[1].mxu0  ;;  %v1813_v46 = vpop.f32.mrb[0].mxu1 }
  0xdb   :  { %v236_v36 = vadd.f32 %v2269_v32, %v235_v35  ;;  %v1798_v37 = vpop.f32.mrb[2].mxu0  ;;  %v308_v49 = vadd.f32 %v1813_v46, %v2269_v32  ;;  %v299_v50 = vpop.f32.mrb[1].mxu1 }
  0xdc   :  { %v247_v38 = vadd.f32 %v1798_v37, %v2269_v32  ;;  %v238_v39 = vpop.f32.mrb[3].mxu0  ;;  %v364_v41 = vmax.f32 %v244_v34, 0.0  ;;  %v300_v53 = vadd.f32 %v2269_v32, %v299_v50  ;;  %v1814_v54 = vpop.f32.mrb[2].mxu1 }
  0xdd   :  { %v239_v40 = vadd.f32 %v2269_v32, %v238_v39  ;;  %v362_v43 = vmax.f32 %v236_v36, 0.0  ;;  %v380_v57 = vmax.f32 %v308_v49, 0.0  ;;  %v311_v58 = vadd.f32 %v1814_v54, %v2269_v32  ;;  %v302_v59 = vpop.f32.mrb[3].mxu1 }
  0xde   :  { %v365_v42 = vmax.f32 %v247_v38, 0.0  ;;  %v378_v63 = vmax.f32 %v300_v53, 0.0  ;;  %v303_v0 = vadd.f32 %v2269_v32, %v302_v59 }
  0xdf   :  { %v363_v44 = vmax.f32 %v239_v40, 0.0  ;;  %v381_v2 = vmax.f32 %v311_v58, 0.0 }
  0xe0   :  { %v395_v45 = vpack.c.bf16 %v365_v42, %v364_v41  ;;  %v379_v4 = vmax.f32 %v303_v0, 0.0 }
  0xe1   :  { %v394_v47 = vpack.c.bf16 %v363_v44, %v362_v43  ;;  %v1801_v48 = vpop.f32.mrb[4].mxu0  ;;  %v2283_v7 = vpack.c.bf16 %v381_v2, %v380_v57 }
  0xe2   :  { %v260_v51 = vadd.f32 %v1801_v48, %v2269_v32  ;;  %v251_v52 = vpop.f32.mrb[5].mxu0  ;;  %v2285_v9 = vpack.c.bf16 %v379_v4, %v378_v63  ;;  %v1817_v10 = vpop.f32.mrb[4].mxu1 }
  0xe3   :  { %v252_v55 = vadd.f32 %v2269_v32, %v251_v52  ;;  %v1802_v56 = vpop.f32.mrb[6].mxu0  ;;  %1843 = vmatprep.mubr.bf16.mxu1 %v394_v47  ;;  %v324_v13 = vadd.f32 %v1817_v10, %v2269_v32  ;;  %v315_v14 = vpop.f32.mrb[5].mxu1 }
  0xe4   :  { %v368_v60 = vmax.f32 %v260_v51, 0.0  ;;  %v263_v61 = vadd.f32 %v1802_v56, %v2269_v32  ;;  %v254_v62 = vpop.f32.mrb[7].mxu0  ;;  %1844 = vmatmul.mubr.bf16.vlgmr.msra.gmra.mrb[16].mxu1 %v395_v45  ;;  %v316_v17 = vadd.f32 %v2269_v32, %v315_v14  ;;  %v1818_v18 = vpop.f32.mrb[6].mxu1 }
  0xe5   :  { %v255_v1 = vadd.f32 %v2269_v32, %v254_v62  ;;  %v366_v5 = vmax.f32 %v252_v55, 0.0  ;;  %v384_v21 = vmax.f32 %v324_v13, 0.0  ;;  %v327_v22 = vadd.f32 %v1818_v18, %v2269_v32  ;;  %v318_v23 = vpop.f32.mrb[7].mxu1 }
  0xe6   :  { %v369_v3 = vmax.f32 %v263_v61, 0.0  ;;  %v382_v27 = vmax.f32 %v316_v17, 0.0  ;;  %v319_v28 = vadd.f32 %v2269_v32, %v318_v23 }
  0xe7   :  { %v367_v6 = vmax.f32 %v255_v1, 0.0  ;;  %v385_v30 = vmax.f32 %v327_v22, 0.0 }
  0xe8   :  { %v397_v8 = vpack.c.bf16 %v369_v3, %v368_v60  ;;  %v383_v33 = vmax.f32 %v319_v28, 0.0 }
  0xe9   :  { %v396_v11 = vpack.c.bf16 %v367_v6, %v366_v5  ;;  %v1805_v12 = vpop.f32.mrb[8].mxu0  ;;  %v405_v36 = vpack.c.bf16 %v385_v30, %v384_v21 }
  0xea   :  { %v276_v15 = vadd.f32 %v1805_v12, %v2269_v32  ;;  %v267_v16 = vpop.f32.mrb[9].mxu0  ;;  %v404_v38 = vpack.c.bf16 %v383_v33, %v382_v27  ;;  %v1821_v39 = vpop.f32.mrb[8].mxu1 }
  0xeb   :  { %v268_v19 = vadd.f32 %v2269_v32, %v267_v16  ;;  %v1806_v20 = vpop.f32.mrb[10].mxu0  ;;  %1847 = vmatprep.mubr.bf16.mxu1 %v396_v11  ;;  %v340_v42 = vadd.f32 %v1821_v39, %v2269_v32  ;;  %v331_v43 = vpop.f32.mrb[9].mxu1 }
  0xec   :  { %v372_v24 = vmax.f32 %v276_v15, 0.0  ;;  %v279_v25 = vadd.f32 %v1806_v20, %v2269_v32  ;;  %v270_v26 = vpop.f32.mrb[11].mxu0  ;;  %1848 = vmatmul.mubr.bf16.gmra.mrb[20].mxu1 %v397_v8  ;;  %v332_v46 = vadd.f32 %v2269_v32, %v331_v43  ;;  %v1822_v47 = vpop.f32.mrb[10].mxu1  ;;  %v1960_v20 = vld [vmem:[%s3018_s5 + $0x30] sm:$0xff]  }
  0xed   :  { %v271_v29 = vadd.f32 %v2269_v32, %v270_v26  ;;  %v370_v34 = vmax.f32 %v268_v19, 0.0  ;;  %v388_v50 = vmax.f32 %v340_v42, 0.0  ;;  %v343_v51 = vadd.f32 %v1822_v47, %v2269_v32  ;;  %v334_v52 = vpop.f32.mrb[11].mxu1  ;;  %1887 = vmatprep.subr.bf16.mxu0 %v1960_v20 }
  0xee   :  { %v373_v31 = vmax.f32 %v279_v25, 0.0  ;;  %v386_v56 = vmax.f32 %v332_v46, 0.0  ;;  %v335_v57 = vadd.f32 %v2269_v32, %v334_v52  ;;  %1888 = vmatpush3.bf16.msra.mxu0 %v1960_v20 }
  0xef   :  { %v371_v35 = vmax.f32 %v271_v29, 0.0  ;;  %v389_v59 = vmax.f32 %v343_v51, 0.0 }
  0xf0   :  { %v399_v37 = vpack.c.bf16 %v373_v31, %v372_v24  ;;  %v387_v61 = vmax.f32 %v335_v57, 0.0 }
  0xf1   :  { %v398_v40 = vpack.c.bf16 %v371_v35, %v370_v34  ;;  %v1809_v41 = vpop.f32.mrb[12].mxu0  ;;  %v407_v0 = vpack.c.bf16 %v389_v59, %v388_v50 }
  0xf2   :  { %v292_v44 = vadd.f32 %v1809_v41, %v2269_v32  ;;  %v283_v45 = vpop.f32.mrb[13].mxu0  ;;  %v406_v2 = vpack.c.bf16 %v387_v61, %v386_v56 }
  0xf3   :  { %v284_v48 = vadd.f32 %v2269_v32, %v283_v45  ;;  %v1810_v49 = vpop.f32.mrb[14].mxu0  ;;  %1851 = vmatprep.mubr.bf16.mxu1 %v398_v40  ;;  %v1825_v3 = vpop.f32.mrb[12].mxu1 }
  0xf4   :  { %v376_v53 = vmax.f32 %v292_v44, 0.0  ;;  %v295_v54 = vadd.f32 %v1810_v49, %v2269_v32  ;;  %v286_v55 = vpop.f32.mrb[15].mxu0  ;;  %1852 = vmatmul.mubr.bf16.gmra.mrb[24].mxu1 %v399_v37  ;;  %v356_v5 = vadd.f32 %v1825_v3, %v2269_v32  ;;  %v347_v6 = vpop.f32.mrb[13].mxu1 }
  0xf5   :  { %v287_v58 = vadd.f32 %v2269_v32, %v286_v55  ;;  %v374_v62 = vmax.f32 %v284_v48, 0.0  ;;  %v348_v8 = vadd.f32 %v2269_v32, %v347_v6  ;;  %v1826_v10 = vpop.f32.mrb[14].mxu1 }
  0xf6   :  { %v377_v60 = vmax.f32 %v295_v54, 0.0  ;;  %v392_v11 = vmax.f32 %v356_v5, 0.0  ;;  %v359_v12 = vadd.f32 %v1826_v10, %v2269_v32  ;;  %v350_v13 = vpop.f32.mrb[15].mxu1 }
  0xf7   :  { %v375_v63 = vmax.f32 %v287_v58, 0.0  ;;  %v390_v14 = vmax.f32 %v348_v8, 0.0  ;;  %v351_v15 = vadd.f32 %v2269_v32, %v350_v13  ;;  %v1961_v32 = vld [vmem:[%s3018_s5 + $0x38] sm:$0xff]  }
  0xf8   :  { %v401_v1 = vpack.c.bf16 %v377_v60, %v376_v53  ;;  %v393_v16 = vmax.f32 %v359_v12, 0.0  ;;  %1889 = vmatprep.subr.bf16.mxu0 %v1961_v32 }
  0xf9   :  { %v400_v4 = vpack.c.bf16 %v375_v63, %v374_v62  ;;  %v391_v17 = vmax.f32 %v351_v15, 0.0  ;;  %1890 = vmatpush3.bf16.msra.mxu0 %v1961_v32 }
  0xfa   :  { %v409_v18 = vpack.c.bf16 %v393_v16, %v392_v11 }
  0xfb   :  { %1855 = vmatprep.mubr.bf16.mxu1 %v400_v4  ;;  %v408_v19 = vpack.c.bf16 %v391_v17, %v390_v14 }
  0xfc   :  { %1856 = vmatmul.mubr.bf16.gmra.mrb[28].mxu1 %v401_v1 }
  0xfd   :  { %1859 = vmatprep.mubr.bf16.mxu1 %v2285_v9 }
 0x104   :  { %1860 = vmatmul.mubr.bf16.gmra.mrb[32].mxu1 %v2283_v7  ;;  %v2318_v7 = vld [vmem:[%s3017_s4] ss:$0 sm:$0xff] }
 0x105   :  { %1863 = vmatprep.mubr.bf16.mxu1 %v404_v38 }
 0x10c   :  { %1864 = vmatmul.mubr.bf16.gmra.mrb[36].mxu1 %v405_v36 }
 0x10d   :  { %1867 = vmatprep.mubr.bf16.mxu1 %v406_v2 }
 0x114   :  { %1868 = vmatmul.mubr.bf16.gmra.mrb[40].mxu1 %v407_v0 }
 0x115   :  { %1871 = vmatprep.mubr.bf16.mxu1 %v408_v19 }
 0x11c   :  { %1872 = vmatmul.mubr.bf16.gmra.mrb[44].mxu1 %v409_v18 }
 0x1b7   :  { %v1845_v9 = vpop.f32.mrb[16].mxu1 }
 0x1b8   :  { %v524_v21 = vadd.f32 %v1845_v9, %v2318_v7  ;;  %v515_v22 = vpop.f32.mrb[17].mxu1 }
 0x1b9   :  { %v516_v23 = vadd.f32 %v2318_v7, %v515_v22  ;;  %v1846_v24 = vpop.f32.mrb[18].mxu1 }
 0x1ba   :  { %v527_v25 = vadd.f32 %v1846_v24, %v2318_v7  ;;  %v518_v26 = vpop.f32.mrb[19].mxu1  ;;  %v644_v28 = vmax.f32 %v524_v21, 0.0 }
 0x1bb   :  { %v519_v27 = vadd.f32 %v2318_v7, %v518_v26  ;;  %v642_v30 = vmax.f32 %v516_v23, 0.0 }
 0x1bc   :  { %v645_v29 = vmax.f32 %v527_v25, 0.0 }
 0x1bd   :  { %v643_v31 = vmax.f32 %v519_v27, 0.0 }
 0x1be   :  { %v675_v33 = vpack.c.bf16 %v645_v29, %v644_v28 }
 0x1bf   :  { %v674_v34 = vpack.c.bf16 %v643_v31, %v642_v30  ;;  %v1849_v35 = vpop.f32.mrb[20].mxu1 }
 0x1c0   :  { %v540_v36 = vadd.f32 %v1849_v35, %v2318_v7  ;;  %v531_v37 = vpop.f32.mrb[21].mxu1 }
 0x1c1   :  { %v532_v38 = vadd.f32 %v2318_v7, %v531_v37  ;;  %v1850_v39 = vpop.f32.mrb[22].mxu1  ;;  %1891 = vmatprep.mubr.bf16.mxu0 %v674_v34 }
 0x1c2   :  { %v543_v40 = vadd.f32 %v1850_v39, %v2318_v7  ;;  %v534_v41 = vpop.f32.mrb[23].mxu1  ;;  %1892 = vmatmul.mubr.bf16.vlgmr.msra.gmra.mrb[16].mxu0 %v675_v33  ;;  %v648_v43 = vmax.f32 %v540_v36, 0.0 }
 0x1c3   :  { %v535_v42 = vadd.f32 %v2318_v7, %v534_v41  ;;  %v646_v45 = vmax.f32 %v532_v38, 0.0 }
 0x1c4   :  { %v649_v44 = vmax.f32 %v543_v40, 0.0 }
 0x1c5   :  { %v647_v46 = vmax.f32 %v535_v42, 0.0 }
 0x1c6   :  { %v677_v47 = vpack.c.bf16 %v649_v44, %v648_v43 }
 0x1c7   :  { %v676_v48 = vpack.c.bf16 %v647_v46, %v646_v45  ;;  %v1853_v49 = vpop.f32.mrb[24].mxu1 }
 0x1c8   :  { %v556_v50 = vadd.f32 %v1853_v49, %v2318_v7  ;;  %v547_v51 = vpop.f32.mrb[25].mxu1 }
 0x1c9   :  { %v548_v52 = vadd.f32 %v2318_v7, %v547_v51  ;;  %v1854_v53 = vpop.f32.mrb[26].mxu1  ;;  %1895 = vmatprep.mubr.bf16.mxu0 %v676_v48 }
 0x1ca   :  { %v559_v54 = vadd.f32 %v1854_v53, %v2318_v7  ;;  %v550_v55 = vpop.f32.mrb[27].mxu1  ;;  %1896 = vmatmul.mubr.bf16.gmra.mrb[20].mxu0 %v677_v47  ;;  %v652_v57 = vmax.f32 %v556_v50, 0.0 }
 0x1cb   :  { %v551_v56 = vadd.f32 %v2318_v7, %v550_v55  ;;  %v650_v59 = vmax.f32 %v548_v52, 0.0 }
 0x1cc   :  { %v653_v58 = vmax.f32 %v559_v54, 0.0 }
 0x1cd   :  { %v651_v60 = vmax.f32 %v551_v56, 0.0 }
 0x1ce   :  { %v679_v61 = vpack.c.bf16 %v653_v58, %v652_v57 }
 0x1cf   :  { %v678_v62 = vpack.c.bf16 %v651_v60, %v650_v59  ;;  %v1857_v63 = vpop.f32.mrb[28].mxu1 }
 0x1d0   :  { %v572_v0 = vadd.f32 %v1857_v63, %v2318_v7  ;;  %v563_v1 = vpop.f32.mrb[29].mxu1 }
 0x1d1   :  { %v564_v2 = vadd.f32 %v2318_v7, %v563_v1  ;;  %v1858_v3 = vpop.f32.mrb[30].mxu1  ;;  %1899 = vmatprep.mubr.bf16.mxu0 %v678_v62 }
 0x1d2   :  { %v575_v4 = vadd.f32 %v1858_v3, %v2318_v7  ;;  %v566_v5 = vpop.f32.mrb[31].mxu1  ;;  %1900 = vmatmul.mubr.bf16.gmra.mrb[24].mxu0 %v679_v61  ;;  %v656_v8 = vmax.f32 %v572_v0, 0.0 }
 0x1d3   :  { %v567_v6 = vadd.f32 %v2318_v7, %v566_v5  ;;  %v654_v11 = vmax.f32 %v564_v2, 0.0 }
 0x1d4   :  { %v657_v10 = vmax.f32 %v575_v4, 0.0 }
 0x1d5   :  { %v655_v12 = vmax.f32 %v567_v6, 0.0  ;;  %v922_v6 = vlaneseq }
 0x1d6   :  { %v681_v13 = vpack.c.bf16 %v657_v10, %v656_v8  ;;  %v2357_v10 = vld [vmem:[%s3019_s6] ss:$0 sm:$0xff]  ;;  %s2114_s6 = smov [#allocation2]  }
 0x1d7   :  { %v680_v14 = vpack.c.bf16 %v655_v12, %v654_v11  ;;  %v1861_v15 = vpop.f32.mrb[32].mxu1  ;;  %v2352_v8 = vand.u32 127, %v922_v6  ;;  %s1507_s19 = sshll.u32 %s2114_s6, 4  ;;  %s1508_s19 = int_to_ptr.vmem [resolvable:$true] %s1507_s19 }
 0x1d8   :  { %v588_v16 = vadd.f32 %v1861_v15, %v2318_v7  ;;  %v579_v17 = vpop.f32.mrb[33].mxu1  ;;  %s2090_s20 = scalar_lea.vmem %s1508_s19, 2048  ;;  %p2095_p1 = scmp.lt.s32.totalorder %s1508_s19, %s1508_s19 }
 0x1d9   :  { %v580_v18 = vadd.f32 %v2318_v7, %v579_v17  ;;  %v1862_v19 = vpop.f32.mrb[34].mxu1  ;;  %1903 = vmatprep.mubr.bf16.mxu0 %v680_v14  ;;  %vm1277_vm2 = vcmp.eq.s32.totalorder %v2352_v8, 2  ;;  %vm924_vm3 = vcmp.lt.s32.totalorder %v2352_v8, 2  ;;  %p2091_p0 = scmp.ne.s32.totalorder %s1508_s19, %s2090_s20  ;;  %p2096_p2 = scmp.lt.s32.totalorder %s2090_s20, %s2090_s20 }
 0x1da   :  { %v591_v20 = vadd.f32 %v1862_v19, %v2318_v7  ;;  %v582_v32 = vpop.f32.mrb[35].mxu1  ;;  %1904 = vmatmul.mubr.bf16.gmra.mrb[28].mxu0 %v681_v13  ;;  %v660_v21 = vmax.f32 %v588_v16, 0.0 }
 0x1db   :  { %v583_v9 = vadd.f32 %v2318_v7, %v582_v32  ;;  %v658_v23 = vmax.f32 %v580_v18, 0.0  ;;  %p2097_p3 = por %p2096_p2, %p2095_p1 }
 0x1dc   :  { %v661_v22 = vmax.f32 %v591_v20, 0.0 }
 0x1dd   :  { %v659_v24 = vmax.f32 %v583_v9, 0.0  ;;  %p2098_p4 = pnand %p2097_p3, %p2091_p0 }
 0x1de   :  { %v683_v25 = vpack.c.bf16 %v661_v22, %v660_v21 }
 0x1df   :  { %v682_v26 = vpack.c.bf16 %v659_v24, %v658_v23  ;;  %v1865_v27 = vpop.f32.mrb[36].mxu1 }
 0x1e0   :  { %v604_v28 = vadd.f32 %v1865_v27, %v2318_v7  ;;  %v595_v29 = vpop.f32.mrb[37].mxu1 }
 0x1e1   :  { %v596_v30 = vadd.f32 %v2318_v7, %v595_v29  ;;  %v1866_v31 = vpop.f32.mrb[38].mxu1  ;;  %1907 = vmatprep.mubr.bf16.mxu0 %v682_v26 }
 0x1e2   :  { %v607_v33 = vadd.f32 %v1866_v31, %v2318_v7  ;;  %v598_v34 = vpop.f32.mrb[39].mxu1  ;;  %1908 = vmatmul.mubr.bf16.gmra.mrb[32].mxu0 %v683_v25  ;;  %v664_v36 = vmax.f32 %v604_v28, 0.0 }
 0x1e3   :  { %v599_v35 = vadd.f32 %v2318_v7, %v598_v34  ;;  %v662_v38 = vmax.f32 %v596_v30, 0.0 }
 0x1e4   :  { %v665_v37 = vmax.f32 %v607_v33, 0.0 }
 0x1e5   :  { %v663_v39 = vmax.f32 %v599_v35, 0.0 }
 0x1e6   :  { %v685_v40 = vpack.c.bf16 %v665_v37, %v664_v36 }
 0x1e7   :  { %v684_v41 = vpack.c.bf16 %v663_v39, %v662_v38  ;;  %v1869_v42 = vpop.f32.mrb[40].mxu1 }
 0x1e8   :  { %v620_v43 = vadd.f32 %v1869_v42, %v2318_v7  ;;  %v611_v44 = vpop.f32.mrb[41].mxu1 }
 0x1e9   :  { %v612_v45 = vadd.f32 %v2318_v7, %v611_v44  ;;  %v1870_v46 = vpop.f32.mrb[42].mxu1  ;;  %1911 = vmatprep.mubr.bf16.mxu0 %v684_v41 }
 0x1ea   :  { %v623_v47 = vadd.f32 %v1870_v46, %v2318_v7  ;;  %v614_v48 = vpop.f32.mrb[43].mxu1  ;;  %1912 = vmatmul.mubr.bf16.gmra.mrb[36].mxu0 %v685_v40  ;;  %v668_v50 = vmax.f32 %v620_v43, 0.0 }
 0x1eb   :  { %v615_v49 = vadd.f32 %v2318_v7, %v614_v48  ;;  %v666_v52 = vmax.f32 %v612_v45, 0.0 }
 0x1ec   :  { %v669_v51 = vmax.f32 %v623_v47, 0.0 }
 0x1ed   :  { %v667_v53 = vmax.f32 %v615_v49, 0.0 }
 0x1ee   :  { %v687_v54 = vpack.c.bf16 %v669_v51, %v668_v50 }
 0x1ef   :  { %v686_v55 = vpack.c.bf16 %v667_v53, %v666_v52  ;;  %v1873_v56 = vpop.f32.mrb[44].mxu1 }
 0x1f0   :  { %v636_v57 = vadd.f32 %v1873_v56, %v2318_v7  ;;  %v627_v58 = vpop.f32.mrb[45].mxu1 }
 0x1f1   :  { %v628_v59 = vadd.f32 %v2318_v7, %v627_v58  ;;  %v1874_v60 = vpop.f32.mrb[46].mxu1  ;;  %1915 = vmatprep.mubr.bf16.mxu0 %v686_v55 }
 0x1f2   :  { %v639_v61 = vadd.f32 %v1874_v60, %v2318_v7  ;;  %v630_v62 = vpop.f32.mrb[47].mxu1  ;;  %1916 = vmatmul.mubr.bf16.gmra.mrb[40].mxu0 %v687_v54  ;;  %v672_v0 = vmax.f32 %v636_v57, 0.0 }
 0x1f3   :  { %v631_v63 = vadd.f32 %v2318_v7, %v630_v62  ;;  %v670_v2 = vmax.f32 %v628_v59, 0.0 }
 0x1f4   :  { %v673_v1 = vmax.f32 %v639_v61, 0.0 }
 0x1f5   :  { %v671_v3 = vmax.f32 %v631_v63, 0.0 }
 0x1f6   :  { %v689_v4 = vpack.c.bf16 %v673_v1, %v672_v0 }
 0x1f7   :  { %v688_v5 = vpack.c.bf16 %v671_v3, %v670_v2 }
 0x1f9   :  { %1919 = vmatprep.mubr.bf16.mxu0 %v688_v5 }
 0x1fa   :  { %1920 = vmatmul.mubr.bf16.gmra.mrb[44].mxu0 %v689_v4 }
 0x295   :  { %v1893_v11 = vpop.f32.mrb[16].mxu0 }
 0x296   :  { %v804_v7 = vadd.f32 %v1893_v11, %v2357_v10  ;;  %v795_v12 = vpop.f32.mrb[17].mxu0 }
 0x297   :  { %v796_v13 = vadd.f32 %v2357_v10, %v795_v12  ;;  %v1894_v14 = vpop.f32.mrb[18].mxu0 }
 0x298   :  { %v2365_v15 = vsel %vm1277_vm2, %v804_v7, 0.0  ;;  %v807_v16 = vadd.f32 %v1894_v14, %v2357_v10  ;;  %v798_v17 = vpop.f32.mrb[19].mxu0  ;;  %v2370_v18 = vsel %vm924_vm3, %v804_v7, -1e+30 }
 0x299   :  { %v2374_v19 = vsel %vm1277_vm2, %v796_v13, 0.0  ;;  %v799_v20 = vadd.f32 %v2357_v10, %v798_v17  ;;  %961 = vmax.xlane.f32.xlu1 %v2370_v18  ;;  %v2380_v32 = vsel %vm924_vm3, %v796_v13, -1e+30 }
 0x29a   :  { %v2384_v9 = vsel %vm1277_vm2, %v807_v16, 0.0  ;;  %957 = vmax.xlane.f32.xlu0 %v2380_v32  ;;  %v2393_v22 = vsel %vm924_vm3, %v807_v16, -1e+30 }
 0x29b   :  { %v2389_v21 = vsel %vm1277_vm2, %v799_v20, 0.0  ;;  %v2398_v24 = vsel %vm924_vm3, %v799_v20, -1e+30 }
 0x29d   :  { %963 = vmax.xlane.f32.xlu1 %v2393_v22  ;;  %v1897_v23 = vpop.f32.mrb[20].mxu0 }
 0x29e   :  { %v820_v25 = vadd.f32 %v1897_v23, %v2357_v10  ;;  %v811_v26 = vpop.f32.mrb[21].mxu0  ;;  %959 = vmax.xlane.f32.xlu0 %v2398_v24 }
 0x29f   :  { %v812_v27 = vadd.f32 %v2357_v10, %v811_v26  ;;  %v1898_v28 = vpop.f32.mrb[22].mxu0 }
 0x2a0   :  { %v2405_v29 = vsel %vm1277_vm2, %v820_v25, 0.0  ;;  %v823_v30 = vadd.f32 %v1898_v28, %v2357_v10  ;;  %v814_v31 = vpop.f32.mrb[23].mxu0  ;;  %v2410_v33 = vsel %vm924_vm3, %v820_v25, -1e+30 }
 0x2a1   :  { %v2414_v34 = vsel %vm1277_vm2, %v812_v27, 0.0  ;;  %v815_v35 = vadd.f32 %v2357_v10, %v814_v31  ;;  %v2433_v40 = vsel %vm924_vm3, %v812_v27, -1e+30 }
 0x2a2   :  { %v2419_v36 = vsel %vm1277_vm2, %v823_v30, 0.0  ;;  %969 = vmax.xlane.f32.xlu0 %v2410_v33  ;;  %v2424_v37 = vsel %vm924_vm3, %v823_v30, -1e+30 }
 0x2a3   :  { %v2428_v38 = vsel %vm1277_vm2, %v815_v35, 0.0  ;;  %971 = vmax.xlane.f32.xlu1 %v2424_v37  ;;  %v2439_v43 = vsel %vm924_vm3, %v815_v35, -1e+30 }
 0x2a5   :  { %v1901_v39 = vpop.f32.mrb[24].mxu0 }
 0x2a6   :  { %v836_v41 = vadd.f32 %v1901_v39, %v2357_v10  ;;  %v827_v42 = vpop.f32.mrb[25].mxu0  ;;  %965 = vmax.xlane.f32.xlu0 %v2433_v40 }
 0x2a7   :  { %v828_v44 = vadd.f32 %v2357_v10, %v827_v42  ;;  %v1902_v45 = vpop.f32.mrb[26].mxu0  ;;  %967 = vmax.xlane.f32.xlu1 %v2439_v43 }
 0x2a8   :  { %v2445_v46 = vsel %vm1277_vm2, %v836_v41, 0.0  ;;  %v839_v47 = vadd.f32 %v1902_v45, %v2357_v10  ;;  %v830_v48 = vpop.f32.mrb[27].mxu0  ;;  %v2450_v49 = vsel %vm924_vm3, %v836_v41, -1e+30 }
 0x2a9   :  { %v2454_v50 = vsel %vm1277_vm2, %v828_v44, 0.0  ;;  %v831_v51 = vadd.f32 %v2357_v10, %v830_v48  ;;  %v2473_v56 = vsel %vm924_vm3, %v828_v44, -1e+30 }
 0x2aa   :  { %v2459_v52 = vsel %vm1277_vm2, %v839_v47, 0.0  ;;  %977 = vmax.xlane.f32.xlu0 %v2450_v49  ;;  %v2464_v53 = vsel %vm924_vm3, %v839_v47, -1e+30 }
 0x2ab   :  { %v2468_v54 = vsel %vm1277_vm2, %v831_v51, 0.0  ;;  %979 = vmax.xlane.f32.xlu1 %v2464_v53  ;;  %v2479_v59 = vsel %vm924_vm3, %v831_v51, -1e+30 }
 0x2ad   :  { %v1905_v55 = vpop.f32.mrb[28].mxu0 }
 0x2ae   :  { %v852_v57 = vadd.f32 %v1905_v55, %v2357_v10  ;;  %v843_v58 = vpop.f32.mrb[29].mxu0  ;;  %973 = vmax.xlane.f32.xlu0 %v2473_v56 }
 0x2af   :  { %v844_v60 = vadd.f32 %v2357_v10, %v843_v58  ;;  %v1906_v61 = vpop.f32.mrb[30].mxu0  ;;  %975 = vmax.xlane.f32.xlu1 %v2479_v59 }
 0x2b0   :  { %v2485_v62 = vsel %vm1277_vm2, %v852_v57, 0.0  ;;  %v855_v63 = vadd.f32 %v1906_v61, %v2357_v10  ;;  %v846_v0 = vpop.f32.mrb[31].mxu0  ;;  %v2490_v1 = vsel %vm924_vm3, %v852_v57, -1e+30 }
 0x2b1   :  { %v2494_v2 = vsel %vm1277_vm2, %v844_v60, 0.0  ;;  %v847_v3 = vadd.f32 %v2357_v10, %v846_v0  ;;  %v2513_v7 = vsel %vm924_vm3, %v844_v60, -1e+30 }
 0x2b2   :  { %v2499_v4 = vsel %vm1277_vm2, %v855_v63, 0.0  ;;  %985 = vmax.xlane.f32.xlu0 %v2490_v1  ;;  %v2504_v5 = vsel %vm924_vm3, %v855_v63, -1e+30 }
 0x2b3   :  { %v2508_v6 = vsel %vm1277_vm2, %v847_v3, 0.0  ;;  %987 = vmax.xlane.f32.xlu1 %v2504_v5  ;;  %v2519_v14 = vsel %vm924_vm3, %v847_v3, -1e+30 }
 0x2b5   :  { %v1909_v11 = vpop.f32.mrb[32].mxu0 }
 0x2b6   :  { %v868_v12 = vadd.f32 %v1909_v11, %v2357_v10  ;;  %v859_v13 = vpop.f32.mrb[33].mxu0  ;;  %981 = vmax.xlane.f32.xlu0 %v2513_v7 }
 0x2b7   :  { %v860_v16 = vadd.f32 %v2357_v10, %v859_v13  ;;  %v1910_v17 = vpop.f32.mrb[34].mxu0  ;;  %983 = vmax.xlane.f32.xlu1 %v2519_v14 }
 0x2b8   :  { %v2525_v20 = vsel %vm1277_vm2, %v868_v12, 0.0  ;;  %v871_v23 = vadd.f32 %v1910_v17, %v2357_v10  ;;  %v862_v25 = vpop.f32.mrb[35].mxu0  ;;  %v2530_v26 = vsel %vm924_vm3, %v868_v12, -1e+30 }
 0x2b9   :  { %v2534_v27 = vsel %vm1277_vm2, %v860_v16, 0.0  ;;  %v863_v28 = vadd.f32 %v2357_v10, %v862_v25  ;;  %v2553_v41 = vsel %vm924_vm3, %v860_v16, -1e+30 }
 0x2ba   :  { %3021 = vst [vmem:[#allocation5_spill] sm:$0xff] %v2534_v27  ;;  %v2539_v30 = vsel %vm1277_vm2, %v871_v23, 0.0  ;;  %993 = vmax.xlane.f32.xlu0 %v2530_v26  ;;  %v2544_v31 = vsel %vm924_vm3, %v871_v23, -1e+30 }
 0x2bb   :  { %3022 = vst [vmem:[#allocation6_spill] sm:$0xff] %v2539_v30  ;;  %v2548_v35 = vsel %vm1277_vm2, %v863_v28, 0.0  ;;  %995 = vmax.xlane.f32.xlu1 %v2544_v31  ;;  %v2559_v45 = vsel %vm924_vm3, %v863_v28, -1e+30 }
 0x2bc   :  { %3023 = vst [vmem:[#allocation7_spill] sm:$0xff] %v2548_v35 }
 0x2bd   :  { %v1913_v39 = vpop.f32.mrb[36].mxu0 }
 0x2be   :  { %v884_v42 = vadd.f32 %v1913_v39, %v2357_v10  ;;  %v875_v44 = vpop.f32.mrb[37].mxu0  ;;  %989 = vmax.xlane.f32.xlu0 %v2553_v41 }
 0x2bf   :  { %v876_v47 = vadd.f32 %v2357_v10, %v875_v44  ;;  %v1914_v48 = vpop.f32.mrb[38].mxu0  ;;  %991 = vmax.xlane.f32.xlu1 %v2559_v45 }
 0x2c0   :  { %v2565_v51 = vsel %vm1277_vm2, %v884_v42, 0.0  ;;  %v887_v55 = vadd.f32 %v1914_v48, %v2357_v10  ;;  %v878_v57 = vpop.f32.mrb[39].mxu0  ;;  %v2570_v58 = vsel %vm924_vm3, %v884_v42, -1e+30 }
 0x2c1   :  { %3024 = vst [vmem:[#allocation8_spill] sm:$0xff] %v2565_v51  ;;  %v2574_v60 = vsel %vm1277_vm2, %v876_v47, 0.0  ;;  %v879_v61 = vadd.f32 %v2357_v10, %v878_v57  ;;  %v2593_v12 = vsel %vm924_vm3, %v876_v47, -1e+30 }
 0x2c2   :  { %3025 = vst [vmem:[#allocation9_spill] sm:$0xff] %v2574_v60  ;;  %v2579_v63 = vsel %vm1277_vm2, %v887_v55, 0.0  ;;  %1001 = vmax.xlane.f32.xlu0 %v2570_v58  ;;  %v2584_v0 = vsel %vm924_vm3, %v887_v55, -1e+30 }
 0x2c3   :  { %3026 = vst [vmem:[#allocation10_spill] sm:$0xff] %v2579_v63  ;;  %v2588_v3 = vsel %vm1277_vm2, %v879_v61, 0.0  ;;  %1003 = vmax.xlane.f32.xlu1 %v2584_v0  ;;  %v2599_v17 = vsel %vm924_vm3, %v879_v61, -1e+30 }
 0x2c4   :  { %3027 = vst [vmem:[#allocation11_spill] sm:$0xff] %v2588_v3 }
 0x2c5   :  { %v1917_v11 = vpop.f32.mrb[40].mxu0 }
 0x2c6   :  { %v900_v13 = vadd.f32 %v1917_v11, %v2357_v10  ;;  %v891_v16 = vpop.f32.mrb[41].mxu0  ;;  %997 = vmax.xlane.f32.xlu0 %v2593_v12 }
 0x2c7   :  { %v892_v23 = vadd.f32 %v2357_v10, %v891_v16  ;;  %v1918_v25 = vpop.f32.mrb[42].mxu0  ;;  %999 = vmax.xlane.f32.xlu1 %v2599_v17 }
 0x2c8   :  { %v2605_v28 = vsel %vm1277_vm2, %v900_v13, 0.0  ;;  %v903_v39 = vadd.f32 %v1918_v25, %v2357_v10  ;;  %v894_v42 = vpop.f32.mrb[43].mxu0  ;;  %v2610_v44 = vsel %vm924_vm3, %v900_v13, -1e+30 }
 0x2c9   :  { %3028 = vst [vmem:[#allocation12_spill] sm:$0xff] %v2605_v28  ;;  %v2614_v47 = vsel %vm1277_vm2, %v892_v23, 0.0  ;;  %v895_v48 = vadd.f32 %v2357_v10, %v894_v42  ;;  %v2633_v13 = vsel %vm924_vm3, %v892_v23, -1e+30 }
 0x2ca   :  { %3029 = vst [vmem:[#allocation13_spill] sm:$0xff] %v2614_v47  ;;  %v2619_v55 = vsel %vm1277_vm2, %v903_v39, 0.0  ;;  %1009 = vmax.xlane.f32.xlu0 %v2610_v44  ;;  %v2624_v57 = vsel %vm924_vm3, %v903_v39, -1e+30 }
 0x2cb   :  { %3030 = vst [vmem:[#allocation14_spill] sm:$0xff] %v2619_v55  ;;  %v2628_v61 = vsel %vm1277_vm2, %v895_v48, 0.0  ;;  %1011 = vmax.xlane.f32.xlu1 %v2624_v57  ;;  %v2639_v39 = vsel %vm924_vm3, %v895_v48, -1e+30 }
 0x2cc   :  { %3031 = vst [vmem:[#allocation15_spill] sm:$0xff] %v2628_v61 }
 0x2cd   :  { %v1921_v11 = vpop.f32.mrb[44].mxu0 }
 0x2ce   :  { %v916_v16 = vadd.f32 %v1921_v11, %v2357_v10  ;;  %v907_v25 = vpop.f32.mrb[45].mxu0  ;;  %1005 = vmax.xlane.f32.xlu0 %v2633_v13 }
 0x2cf   :  { %v908_v42 = vadd.f32 %v2357_v10, %v907_v25  ;;  %v1922_v47 = vpop.f32.mrb[46].mxu0  ;;  %1007 = vmax.xlane.f32.xlu1 %v2639_v39 }
 0x2d0   :  { %v2645_v61 = vsel %vm1277_vm2, %v916_v16, 0.0  ;;  %v919_v23 = vadd.f32 %v1922_v47, %v2357_v10  ;;  %v910_v55 = vpop.f32.mrb[47].mxu0 }
 0x2d1   :  { %3032 = vst [vmem:[#allocation16_spill] sm:$0xff] %v2645_v61  ;;  %v2650_v11 = vsel %vm1277_vm2, %v908_v42, 0.0  ;;  %v911_v28 = vadd.f32 %v2357_v10, %v910_v55  ;;  %v2655_v48 = vsel %vm924_vm3, %v908_v42, -1e+30  ;;  %v2673_v10 = vsel %vm924_vm3, %v916_v16, -1e+30 }
 0x2d2   :  { %3033 = vst [vmem:[#allocation17_spill] sm:$0xff] %v2650_v11  ;;  %v2659_v25 = vsel %vm1277_vm2, %v919_v23, 0.0  ;;  %1013 = vmax.xlane.f32.xlu0 %v2655_v48  ;;  %v2678_v55 = vsel %vm924_vm3, %v919_v23, -1e+30 }
 0x2d3   :  { %3034 = vst [vmem:[#allocation18_spill] sm:$0xff] %v2659_v25  ;;  %v2664_v47 = vsel %vm1277_vm2, %v911_v28, 0.0  ;;  %v2668_v61 = vsel %vm924_vm3, %v911_v28, -1e+30 }
 0x2d4   :  { %3035 = vst [vmem:[#allocation19_spill] sm:$0xff] %v2664_v47  ;;  %1015 = vmax.xlane.f32.xlu1 %v2668_v61 }
 0x2d6   :  { %1017 = vmax.xlane.f32.xlu0 %v2673_v10 }
 0x2d8   :  { %1019 = vmax.xlane.f32.xlu1 %v2678_v55 }
 0x326   :  { %v962_v42 = vpop.xlane.xlu1 %961 }
 0x327   :  { %v1023_v25 = vsub.f32 %v2370_v18, %v962_v42  ;;  %v958_v47 = vpop.xlane.xlu0 %957 }
 0x328   :  { %v1021_v28 = vsub.f32 %v2380_v32, %v958_v47 }
 0x329   :  { %v1057_v11 = vmul.f32 1.442695, %v1023_v25 }
 0x32a   :  { %v1053_v3 = vmul.f32 1.442695, %v1021_v28  ;;  %v964_v60 = vpop.xlane.xlu1 %963 }
 0x32b   :  { %1962 = vpow2.f32 %v1057_v11  ;;  %v1024_v16 = vsub.f32 %v2393_v22, %v964_v60  ;;  %v960_v63 = vpop.xlane.xlu0 %959 }
 0x32c   :  { %v1022_v51 = vsub.f32 %v2398_v24, %v960_v63  ;;  %1964 = vpow2.f32 %v1053_v3 }
 0x32d   :  { %v1059_v23 = vmul.f32 1.442695, %v1024_v16 }
 0x32e   :  { %v1055_v35 = vmul.f32 1.442695, %v1022_v51 }
 0x32f   :  { %1966 = vpow2.f32 %v1059_v23  ;;  %v970_v27 = vpop.xlane.xlu0 %969 }
 0x330   :  { %v1027_v30 = vsub.f32 %v2410_v33, %v970_v27  ;;  %v972_v18 = vpop.xlane.xlu1 %971  ;;  %1968 = vpow2.f32 %v1055_v35 }
 0x331   :  { %v1028_v32 = vsub.f32 %v2424_v37, %v972_v18 }
 0x332   :  { %v1065_v25 = vmul.f32 1.442695, %v1027_v30 }
 0x333   :  { %v1067_v47 = vmul.f32 1.442695, %v1028_v32  ;;  %v966_v42 = vpop.xlane.xlu0 %965 }
 0x334   :  { %1970 = vpow2.f32 %v1065_v25  ;;  %v1025_v22 = vsub.f32 %v2433_v40, %v966_v42  ;;  %v968_v60 = vpop.xlane.xlu1 %967 }
 0x335   :  { %v1963_v11 = vpop.eup %1962  ;;  %1972 = vpow2.f32 %v1067_v47  ;;  %v1026_v24 = vsub.f32 %v2439_v43, %v968_v60 }
 0x336   :  { %v1061_v51 = vmul.f32 1.442695, %v1025_v22  ;;  %v2691_v63 = vsel %vm924_vm3, %v1963_v11, 0.0  ;;  %v1965_v33 = vpop.eup %1964 }
 0x337   :  { %v1063_v27 = vmul.f32 1.442695, %v1026_v24  ;;  %1153 = vadd.xlane.f32.xlu0 %v2691_v63  ;;  %v978_v37 = vpop.xlane.xlu0 %977  ;;  %v2702_v16 = vsel %vm924_vm3, %v1965_v33, 0.0 }
 0x338   :  { %1974 = vpow2.f32 %v1061_v51  ;;  %v1031_v30 = vsub.f32 %v2450_v49, %v978_v37  ;;  %v980_v35 = vpop.xlane.xlu1 %979 }
 0x339   :  { %v1967_v40 = vpop.eup %1966  ;;  %1976 = vpow2.f32 %v1063_v27  ;;  %v1032_v3 = vsub.f32 %v2464_v53, %v980_v35 }
 0x33a   :  { %v1073_v28 = vmul.f32 1.442695, %v1031_v30  ;;  %v2698_v43 = vsel %vm924_vm3, %v1967_v40, 0.0  ;;  %v1969_v23 = vpop.eup %1968 }
 0x33b   :  { %v1075_v18 = vmul.f32 1.442695, %v1032_v3  ;;  %1155 = vadd.xlane.f32.xlu1 %v2698_v43  ;;  %1149 = vadd.xlane.f32.xlu0 %v2702_v16  ;;  %v974_v49 = vpop.xlane.xlu0 %973  ;;  %v2710_v22 = vsel %vm924_vm3, %v1969_v23, 0.0 }
 0x33c   :  { %1978 = vpow2.f32 %v1073_v28  ;;  %v1029_v32 = vsub.f32 %v2473_v56, %v974_v49  ;;  %v976_v53 = vpop.xlane.xlu1 %975 }
 0x33d   :  { %1980 = vpow2.f32 %v1075_v18  ;;  %v1030_v25 = vsub.f32 %v2479_v59, %v976_v53 }
 0x33e   :  { %v1971_v47 = vpop.eup %1970  ;;  %v1069_v42 = vmul.f32 1.442695, %v1029_v32 }
 0x33f   :  { %v1973_v60 = vpop.eup %1972  ;;  %v1071_v11 = vmul.f32 1.442695, %v1030_v25  ;;  %1151 = vadd.xlane.f32.xlu1 %v2710_v22  ;;  %v986_v24 = vpop.xlane.xlu0 %985  ;;  %v2715_v51 = vsel %vm924_vm3, %v1971_v47, 0.0 }
 0x340   :  { %1982 = vpow2.f32 %v1069_v42  ;;  %v1035_v56 = vsub.f32 %v2490_v1, %v986_v24  ;;  %v988_v33 = vpop.xlane.xlu1 %987  ;;  %1161 = vadd.xlane.f32.xlu0 %v2715_v51  ;;  %v2722_v30 = vsel %vm924_vm3, %v1973_v60, 0.0 }
 0x341   :  { %1984 = vpow2.f32 %v1071_v11  ;;  %v1036_v59 = vsub.f32 %v2504_v5, %v988_v33 }
 0x342   :  { %v1975_v27 = vpop.eup %1974  ;;  %v1081_v37 = vmul.f32 1.442695, %v1035_v56 }
 0x343   :  { %v1977_v35 = vpop.eup %1976  ;;  %v1083_v40 = vmul.f32 1.442695, %v1036_v59  ;;  %1163 = vadd.xlane.f32.xlu1 %v2722_v30  ;;  %v982_v3 = vpop.xlane.xlu0 %981  ;;  %v2727_v1 = vsel %vm924_vm3, %v1975_v27, 0.0 }
 0x344   :  { %1986 = vpow2.f32 %v1081_v37  ;;  %v1033_v28 = vsub.f32 %v2513_v7, %v982_v3  ;;  %v984_v23 = vpop.xlane.xlu1 %983  ;;  %1157 = vadd.xlane.f32.xlu0 %v2727_v1  ;;  %v2734_v32 = vsel %vm924_vm3, %v1977_v35, 0.0 }
 0x345   :  { %1988 = vpow2.f32 %v1083_v40  ;;  %v1034_v5 = vsub.f32 %v2519_v14, %v984_v23 }
 0x346   :  { %v1979_v18 = vpop.eup %1978  ;;  %v1077_v49 = vmul.f32 1.442695, %v1033_v28 }
 0x347   :  { %v1981_v53 = vpop.eup %1980  ;;  %v1079_v25 = vmul.f32 1.442695, %v1034_v5  ;;  %1159 = vadd.xlane.f32.xlu1 %v2734_v32  ;;  %v994_v47 = vpop.xlane.xlu0 %993  ;;  %v2739_v7 = vsel %vm924_vm3, %v1979_v18, 0.0 }
 0x348   :  { %1990 = vpow2.f32 %v1077_v49  ;;  %v1039_v42 = vsub.f32 %v2530_v26, %v994_v47  ;;  %v996_v60 = vpop.xlane.xlu1 %995  ;;  %1169 = vadd.xlane.f32.xlu0 %v2739_v7  ;;  %v2746_v56 = vsel %vm924_vm3, %v1981_v53, 0.0 }
 0x349   :  { %1992 = vpow2.f32 %v1079_v25  ;;  %v1040_v14 = vsub.f32 %v2544_v31, %v996_v60 }
 0x34a   :  { %v1983_v11 = vpop.eup %1982  ;;  %v1089_v24 = vmul.f32 1.442695, %v1039_v42 }
 0x34b   :  { %v1985_v33 = vpop.eup %1984  ;;  %v1091_v59 = vmul.f32 1.442695, %v1040_v14  ;;  %1171 = vadd.xlane.f32.xlu1 %v2746_v56  ;;  %v990_v27 = vpop.xlane.xlu0 %989  ;;  %v2751_v26 = vsel %vm924_vm3, %v1983_v11, 0.0 }
 0x34c   :  { %1994 = vpow2.f32 %v1089_v24  ;;  %v1037_v37 = vsub.f32 %v2553_v41, %v990_v27  ;;  %v992_v35 = vpop.xlane.xlu1 %991  ;;  %1165 = vadd.xlane.f32.xlu0 %v2751_v26  ;;  %v2758_v28 = vsel %vm924_vm3, %v1985_v33, 0.0 }
 0x34d   :  { %1996 = vpow2.f32 %v1091_v59  ;;  %v1038_v31 = vsub.f32 %v2559_v45, %v992_v35 }
 0x34e   :  { %v1987_v40 = vpop.eup %1986  ;;  %v1085_v3 = vmul.f32 1.442695, %v1037_v37 }
 0x34f   :  { %v1989_v23 = vpop.eup %1988  ;;  %v1087_v5 = vmul.f32 1.442695, %v1038_v31  ;;  %1167 = vadd.xlane.f32.xlu1 %v2758_v28  ;;  %v1002_v18 = vpop.xlane.xlu0 %1001  ;;  %v2763_v41 = vsel %vm924_vm3, %v1987_v40, 0.0 }
 0x350   :  { %1998 = vpow2.f32 %v1085_v3  ;;  %v1043_v49 = vsub.f32 %v2570_v58, %v1002_v18  ;;  %v1004_v53 = vpop.xlane.xlu1 %1003  ;;  %1177 = vadd.xlane.f32.xlu0 %v2763_v41  ;;  %v2770_v42 = vsel %vm924_vm3, %v1989_v23, 0.0 }
 0x351   :  { %2000 = vpow2.f32 %v1087_v5  ;;  %v1044_v45 = vsub.f32 %v2584_v0, %v1004_v53 }
 0x352   :  { %v1991_v25 = vpop.eup %1990  ;;  %v1097_v47 = vmul.f32 1.442695, %v1043_v49 }
 0x353   :  { %v1993_v60 = vpop.eup %1992  ;;  %v1099_v14 = vmul.f32 1.442695, %v1044_v45  ;;  %1179 = vadd.xlane.f32.xlu1 %v2770_v42  ;;  %v998_v11 = vpop.xlane.xlu0 %997  ;;  %v2775_v58 = vsel %vm924_vm3, %v1991_v25, 0.0 }
 0x354   :  { %2002 = vpow2.f32 %v1097_v47  ;;  %v1041_v24 = vsub.f32 %v2593_v12, %v998_v11  ;;  %v1000_v33 = vpop.xlane.xlu1 %999  ;;  %1173 = vadd.xlane.f32.xlu0 %v2775_v58  ;;  %v2782_v37 = vsel %vm924_vm3, %v1993_v60, 0.0 }
 0x355   :  { %2004 = vpow2.f32 %v1099_v14  ;;  %v1042_v0 = vsub.f32 %v2599_v17, %v1000_v33 }
 0x356   :  { %v1995_v59 = vpop.eup %1994  ;;  %v1093_v27 = vmul.f32 1.442695, %v1041_v24 }
 0x357   :  { %v1997_v35 = vpop.eup %1996  ;;  %v1095_v31 = vmul.f32 1.442695, %v1042_v0  ;;  %1175 = vadd.xlane.f32.xlu1 %v2782_v37  ;;  %v1010_v40 = vpop.xlane.xlu0 %1009  ;;  %v2787_v12 = vsel %vm924_vm3, %v1995_v59, 0.0 }
 0x358   :  { %2006 = vpow2.f32 %v1093_v27  ;;  %v1047_v3 = vsub.f32 %v2610_v44, %v1010_v40  ;;  %v1012_v23 = vpop.xlane.xlu1 %1011  ;;  %1185 = vadd.xlane.f32.xlu0 %v2787_v12  ;;  %v2794_v49 = vsel %vm924_vm3, %v1997_v35, 0.0 }
 0x359   :  { %2008 = vpow2.f32 %v1095_v31  ;;  %v1048_v17 = vsub.f32 %v2624_v57, %v1012_v23 }
 0x35a   :  { %v1999_v5 = vpop.eup %1998  ;;  %v1105_v18 = vmul.f32 1.442695, %v1047_v3 }
 0x35b   :  { %v2001_v53 = vpop.eup %2000  ;;  %v1107_v45 = vmul.f32 1.442695, %v1048_v17  ;;  %1187 = vadd.xlane.f32.xlu1 %v2794_v49  ;;  %v1006_v25 = vpop.xlane.xlu0 %1005  ;;  %v2799_v44 = vsel %vm924_vm3, %v1999_v5, 0.0 }
 0x35c   :  { %2010 = vpow2.f32 %v1105_v18  ;;  %v1045_v47 = vsub.f32 %v2633_v13, %v1006_v25  ;;  %v1008_v60 = vpop.xlane.xlu1 %1007  ;;  %1181 = vadd.xlane.f32.xlu0 %v2799_v44  ;;  %v2806_v24 = vsel %vm924_vm3, %v2001_v53, 0.0 }
 0x35d   :  { %2012 = vpow2.f32 %v1107_v45  ;;  %v1046_v57 = vsub.f32 %v2639_v39, %v1008_v60 }
 0x35e   :  { %v2003_v14 = vpop.eup %2002  ;;  %v1101_v11 = vmul.f32 1.442695, %v1045_v47 }
 0x35f   :  { %v2005_v33 = vpop.eup %2004  ;;  %v1103_v0 = vmul.f32 1.442695, %v1046_v57  ;;  %1183 = vadd.xlane.f32.xlu1 %v2806_v24  ;;  %v1014_v59 = vpop.xlane.xlu0 %1013  ;;  %v2811_v13 = vsel %vm924_vm3, %v2003_v14, 0.0 }
 0x360   :  { %2014 = vpow2.f32 %v1101_v11  ;;  %v1049_v27 = vsub.f32 %v2655_v48, %v1014_v59  ;;  %1193 = vadd.xlane.f32.xlu0 %v2811_v13  ;;  %v2818_v3 = vsel %vm924_vm3, %v2005_v33, 0.0 }
 0x361   :  { %2016 = vpow2.f32 %v1103_v0  ;;  %v1016_v39 = vpop.xlane.xlu1 %1015 }
 0x362   :  { %v2007_v35 = vpop.eup %2006  ;;  %v1109_v31 = vmul.f32 1.442695, %v1049_v27  ;;  %v1050_v40 = vsub.f32 %v2668_v61, %v1016_v39 }
 0x363   :  { %v2009_v23 = vpop.eup %2008  ;;  %1195 = vadd.xlane.f32.xlu1 %v2818_v3  ;;  %v1018_v17 = vpop.xlane.xlu0 %1017  ;;  %v2823_v5 = vsel %vm924_vm3, %v2007_v35, 0.0 }
 0x364   :  { %2018 = vpow2.f32 %v1109_v31  ;;  %v1111_v48 = vmul.f32 1.442695, %v1050_v40  ;;  %v1051_v18 = vsub.f32 %v2673_v10, %v1018_v17  ;;  %1189 = vadd.xlane.f32.xlu0 %v2823_v5  ;;  %v2830_v47 = vsel %vm924_vm3, %v2009_v23, 0.0 }
 0x365   :  { %v1020_v53 = vpop.xlane.xlu1 %1019 }
 0x366   :  { %v2011_v61 = vpop.eup %2010  ;;  %2020 = vpow2.f32 %v1111_v48  ;;  %v1113_v45 = vmul.f32 1.442695, %v1051_v18  ;;  %v1052_v25 = vsub.f32 %v2678_v55, %v1020_v53 }
 0x367   :  { %v2013_v60 = vpop.eup %2012  ;;  %1191 = vadd.xlane.f32.xlu1 %v2830_v47  ;;  %v2835_v57 = vsel %vm924_vm3, %v2011_v61, 0.0 }
 0x368   :  { %2022 = vpow2.f32 %v1113_v45  ;;  %v1115_v10 = vmul.f32 1.442695, %v1052_v25  ;;  %1201 = vadd.xlane.f32.xlu0 %v2835_v57  ;;  %v2840_v55 = vsel %vm924_vm3, %v2013_v60, 0.0 }
 0x36a   :  { %v2015_v14 = vpop.eup %2014  ;;  %2024 = vpow2.f32 %v1115_v10 }
 0x36b   :  { %v2017_v11 = vpop.eup %2016  ;;  %1203 = vadd.xlane.f32.xlu1 %v2840_v55  ;;  %v2845_v33 = vsel %vm924_vm3, %v2015_v14, 0.0 }
 0x36c   :  { %1197 = vadd.xlane.f32.xlu0 %v2845_v33  ;;  %v2850_v59 = vsel %vm924_vm3, %v2017_v11, 0.0 }
 0x36e   :  { %v2019_v0 = vpop.eup %2018 }
 0x36f   :  { %1199 = vadd.xlane.f32.xlu1 %v2850_v59  ;;  %v2855_v27 = vsel %vm924_vm3, %v2019_v0, 0.0 }
 0x370   :  { %v2021_v39 = vpop.eup %2020  ;;  %1205 = vadd.xlane.f32.xlu0 %v2855_v27 }
 0x371   :  { %v2860_v35 = vsel %vm924_vm3, %v2021_v39, 0.0 }
 0x372   :  { %v2023_v31 = vpop.eup %2022 }
 0x373   :  { %1207 = vadd.xlane.f32.xlu1 %v2860_v35  ;;  %v2865_v40 = vsel %vm924_vm3, %v2023_v31, 0.0 }
 0x374   :  { %v2025_v23 = vpop.eup %2024  ;;  %1209 = vadd.xlane.f32.xlu0 %v2865_v40 }
 0x375   :  { %v2870_v17 = vsel %vm924_vm3, %v2025_v23, 0.0 }
 0x377   :  { %1211 = vadd.xlane.f32.xlu1 %v2870_v17 }
 0x3c4   :  { %v1154_v48 = vpop.xlane.xlu0 %1153 }
 0x3c5   :  { %2026 = vrcp.f32 %v1154_v48 }
 0x3c8   :  { %v1156_v18 = vpop.xlane.xlu1 %1155  ;;  %v1150_v53 = vpop.xlane.xlu0 %1149 }
 0x3c9   :  { %2028 = vrcp.f32 %v1156_v18 }
 0x3ca   :  { %2030 = vrcp.f32 %v1150_v53 }
 0x3cc   :  { %v1152_v61 = vpop.xlane.xlu1 %1151 }
 0x3cd   :  { %2032 = vrcp.f32 %v1152_v61  ;;  %v1162_v45 = vpop.xlane.xlu0 %1161 }
 0x3ce   :  { %2034 = vrcp.f32 %v1162_v45 }
 0x3cf   :  { %v2027_v25 = vpop.eup %2026 }
 0x3d0   :  { %v1164_v60 = vpop.xlane.xlu1 %1163  ;;  %v1247_v14 = vmul.f32 %v2027_v25, %v2691_v63 }
 0x3d1   :  { %2036 = vrcp.f32 %v1164_v60  ;;  %v1158_v10 = vpop.xlane.xlu0 %1157 }
 0x3d2   :  { %2038 = vrcp.f32 %v1158_v10  ;;  %v1312_v48 = vsel %vm924_vm3, %v1247_v14, %v2365_v15 }
 0x3d3   :  { %v2029_v11 = vpop.eup %2028 }
 0x3d4   :  { %v2031_v0 = vpop.eup %2030  ;;  %v1248_v39 = vmul.f32 %v2029_v11, %v2698_v43  ;;  %v1160_v31 = vpop.xlane.xlu1 %1159 }
 0x3d5   :  { %2040 = vrcp.f32 %v1160_v31  ;;  %v1170_v23 = vpop.xlane.xlu0 %1169  ;;  %v1245_v53 = vmul.f32 %v2031_v0, %v2702_v16 }
 0x3d6   :  { %v1313_v18 = vsel %vm924_vm3, %v1248_v39, %v2384_v9  ;;  %2042 = vrcp.f32 %v1170_v23 }
 0x3d7   :  { %v2033_v63 = vpop.eup %2032  ;;  %v1641_v61 = vpack.c.bf16 %v1313_v18, %v1312_v48  ;;  %v1310_v15 = vsel %vm924_vm3, %v1245_v53, %v2374_v19 }
 0x3d8   :  { %v2035_v45 = vpop.eup %2034  ;;  %v1246_v25 = vmul.f32 %v2033_v63, %v2710_v22  ;;  %v1172_v43 = vpop.xlane.xlu1 %1171 }
 0x3d9   :  { %1713 = vst [vmem:[#allocation2 + $0x8] sm:$0xff] %v1641_v61   ;;  %2044 = vrcp.f32 %v1172_v43  ;;  %v1166_v60 = vpop.xlane.xlu0 %1165  ;;  %v1251_v16 = vmul.f32 %v2035_v45, %v2715_v51 }
 0x3da   :  { %v1311_v9 = vsel %vm924_vm3, %v1246_v25, %v2389_v21  ;;  %2046 = vrcp.f32 %v1166_v60 }
 0x3db   :  { %v2037_v10 = vpop.eup %2036  ;;  %v1636_v14 = vpack.c.bf16 %v1311_v9, %v1310_v15  ;;  %v1316_v19 = vsel %vm924_vm3, %v1251_v16, %v2405_v29 }
 0x3dc   :  { %v2039_v11 = vpop.eup %2038  ;;  %v1252_v22 = vmul.f32 %v2037_v10, %v2722_v30  ;;  %v1168_v0 = vpop.xlane.xlu1 %1167 }
 0x3dd   :  { %1637 = vst [vmem:[#allocation2] sm:$0xff] %v1636_v14   ;;  %2048 = vrcp.f32 %v1168_v0  ;;  %v1178_v39 = vpop.xlane.xlu0 %1177  ;;  %v1249_v51 = vmul.f32 %v2039_v11, %v2727_v1 }
 0x3de   :  { %v1317_v21 = vsel %vm924_vm3, %v1252_v22, %v2419_v36  ;;  %2050 = vrcp.f32 %v1178_v39 }
 0x3df   :  { %v2041_v31 = vpop.eup %2040  ;;  %v1651_v23 = vpack.c.bf16 %v1317_v21, %v1316_v19  ;;  %v1314_v29 = vsel %vm924_vm3, %v1249_v51, %v2414_v34 }
 0x3e0   :  { %v2043_v48 = vpop.eup %2042  ;;  %v1250_v30 = vmul.f32 %v2041_v31, %v2734_v32  ;;  %v1180_v18 = vpop.xlane.xlu1 %1179 }
 0x3e1   :  { %1715 = vst [vmem:[#allocation2 + $0x18] sm:$0xff] %v1651_v23   ;;  %2052 = vrcp.f32 %v1180_v18  ;;  %v1174_v53 = vpop.xlane.xlu0 %1173  ;;  %v1255_v1 = vmul.f32 %v2043_v48, %v2739_v7 }
 0x3e2   :  { %v1315_v36 = vsel %vm924_vm3, %v1250_v30, %v2428_v38  ;;  %2054 = vrcp.f32 %v1174_v53 }
 0x3e3   :  { %v2045_v63 = vpop.eup %2044  ;;  %v1646_v61 = vpack.c.bf16 %v1315_v36, %v1314_v29  ;;  %v1320_v34 = vsel %vm924_vm3, %v1255_v1, %v2445_v46  ;;  %v3036_v36 = vld [vmem:[#allocation6_spill] sm:$0xff] }
 0x3e4   :  { %v2047_v45 = vpop.eup %2046  ;;  %v1256_v32 = vmul.f32 %v2045_v63, %v2746_v56  ;;  %v1176_v25 = vpop.xlane.xlu1 %1175 }
 0x3e5   :  { %1714 = vst [vmem:[#allocation2 + $0x10] sm:$0xff] %v1646_v61   ;;  %2056 = vrcp.f32 %v1176_v25  ;;  %v1186_v43 = vpop.xlane.xlu0 %1185  ;;  %v1253_v7 = vmul.f32 %v2047_v45, %v2751_v26  ;;  %v3037_v25 = vld [vmem:[#allocation5_spill] sm:$0xff] }
 0x3e6   :  { %v1321_v38 = vsel %vm924_vm3, %v1256_v32, %v2459_v52  ;;  %2058 = vrcp.f32 %v1186_v43  ;;  %v3038_v43 = vld [vmem:[#allocation7_spill] sm:$0xff] }
 0x3e7   :  { %v2049_v60 = vpop.eup %2048  ;;  %v1661_v15 = vpack.c.bf16 %v1321_v38, %v1320_v34  ;;  %v1318_v46 = vsel %vm924_vm3, %v1253_v7, %v2454_v50 }
 0x3e8   :  { %v2051_v9 = vpop.eup %2050  ;;  %v1254_v56 = vmul.f32 %v2049_v60, %v2758_v28  ;;  %v1188_v16 = vpop.xlane.xlu1 %1187 }
 0x3e9   :  { %1717 = vst [vmem:[#allocation2 + $0x28] sm:$0xff] %v1661_v15   ;;  %2060 = vrcp.f32 %v1188_v16  ;;  %v1182_v10 = vpop.xlane.xlu0 %1181  ;;  %v1259_v26 = vmul.f32 %v2051_v9, %v2763_v41 }
 0x3ea   :  { %v1319_v52 = vsel %vm924_vm3, %v1254_v56, %v2468_v54  ;;  %2062 = vrcp.f32 %v1182_v10  ;;  %v3039_v56 = vld [vmem:[#allocation8_spill] sm:$0xff]  ;;  %v3040_v10 = vld [vmem:[#allocation10_spill] sm:$0xff] }
 0x3eb   :  { %v2053_v14 = vpop.eup %2052  ;;  %v1656_v11 = vpack.c.bf16 %v1319_v52, %v1318_v46  ;;  %v1324_v50 = vsel %vm924_vm3, %v1259_v26, %v2485_v62 }
 0x3ec   :  { %v2055_v22 = vpop.eup %2054  ;;  %v1260_v28 = vmul.f32 %v2053_v14, %v2770_v42  ;;  %v1184_v0 = vpop.xlane.xlu1 %1183 }
 0x3ed   :  { %1716 = vst [vmem:[#allocation2 + $0x20] sm:$0xff] %v1656_v11   ;;  %2064 = vrcp.f32 %v1184_v0  ;;  %v1194_v39 = vpop.xlane.xlu0 %1193  ;;  %v1257_v41 = vmul.f32 %v2055_v22, %v2775_v58 }
 0x3ee   :  { %v1325_v54 = vsel %vm924_vm3, %v1260_v28, %v2499_v4  ;;  %2066 = vrcp.f32 %v1194_v39  ;;  %v3041_v28 = vld [vmem:[#allocation9_spill] sm:$0xff]  ;;  %v3042_v39 = vld [vmem:[#allocation11_spill] sm:$0xff] }
 0x3ef   :  { %v2057_v19 = vpop.eup %2056  ;;  %v1671_v21 = vpack.c.bf16 %v1325_v54, %v1324_v50  ;;  %v1322_v62 = vsel %vm924_vm3, %v1257_v41, %v2494_v2 }
 0x3f0   :  { %v2059_v51 = vpop.eup %2058  ;;  %v1258_v42 = vmul.f32 %v2057_v19, %v2782_v37  ;;  %v1196_v31 = vpop.xlane.xlu1 %1195 }
 0x3f1   :  { %1719 = vst [vmem:[#allocation2 + $0x38] sm:$0xff] %v1671_v21   ;;  %2068 = vrcp.f32 %v1196_v31  ;;  %v1190_v23 = vpop.xlane.xlu0 %1189  ;;  %v1263_v58 = vmul.f32 %v2059_v51, %v2787_v12  ;;  %v3043_v51 = vld [vmem:[#allocation12_spill] sm:$0xff]  ;;  %v3044_v31 = vld [vmem:[#allocation14_spill] sm:$0xff] }
 0x3f2   :  { %v1323_v4 = vsel %vm924_vm3, %v1258_v42, %v2508_v6  ;;  %2070 = vrcp.f32 %v1190_v23 }
 0x3f3   :  { %v2061_v48 = vpop.eup %2060  ;;  %v1666_v30 = vpack.c.bf16 %v1323_v4, %v1322_v62  ;;  %v1328_v2 = vsel %vm924_vm3, %v1263_v58, %v2525_v20 }
 0x3f4   :  { %v2063_v18 = vpop.eup %2062  ;;  %v1264_v37 = vmul.f32 %v2061_v48, %v2794_v49  ;;  %v1192_v53 = vpop.xlane.xlu1 %1191 }
 0x3f5   :  { %1718 = vst [vmem:[#allocation2 + $0x30] sm:$0xff] %v1666_v30   ;;  %2072 = vrcp.f32 %v1192_v53  ;;  %v1202_v29 = vpop.xlane.xlu0 %1201  ;;  %v1261_v12 = vmul.f32 %v2063_v18, %v2799_v44  ;;  %v3046_v18 = vld [vmem:[#allocation15_spill] sm:$0xff] }
 0x3f6   :  { %v1329_v6 = vsel %vm924_vm3, %v1264_v37, %v3036_v36  ;;  %2074 = vrcp.f32 %v1202_v29 }
 0x3f7   :  { %v2065_v1 = vpop.eup %2064  ;;  %v1681_v63 = vpack.c.bf16 %v1329_v6, %v1328_v2  ;;  %v1326_v20 = vsel %vm924_vm3, %v1261_v12, %v3037_v25  ;;  %v3047_v6 = vld [vmem:[#allocation17_spill] sm:$0xff]  ;;  %v3048_v12 = vld [vmem:[#allocation19_spill] sm:$0xff] }
 0x3f8   :  { %v2067_v61 = vpop.eup %2066  ;;  %v1262_v49 = vmul.f32 %v2065_v1, %v2806_v24  ;;  %v1204_v45 = vpop.xlane.xlu1 %1203 }
 0x3f9   :  { %1721 = vst [vmem:[#allocation2 + $0x48] sm:$0xff] %v1681_v63   ;;  %2076 = vrcp.f32 %v1204_v45  ;;  %v1198_v32 = vpop.xlane.xlu0 %1197  ;;  %v1267_v44 = vmul.f32 %v2067_v61, %v2811_v13  ;;  %v3049_v45 = vld [vmem:[#allocation16_spill] sm:$0xff] }
 0x3fa   :  { %v1327_v34 = vsel %vm924_vm3, %v1262_v49, %v3038_v43  ;;  %2078 = vrcp.f32 %v1198_v32  ;;  %v3050_v32 = vld [vmem:[#allocation18_spill] sm:$0xff] }
 0x3fb   :  { %v2069_v38 = vpop.eup %2068  ;;  %v1676_v7 = vpack.c.bf16 %v1327_v34, %v1326_v20  ;;  %v1332_v16 = vsel %vm924_vm3, %v1267_v44, %v3039_v56 }
 0x3fc   :  { %v2071_v60 = vpop.eup %2070  ;;  %v1268_v24 = vmul.f32 %v2069_v38, %v2818_v3  ;;  %v1200_v15 = vpop.xlane.xlu1 %1199 }
 0x3fd   :  { %1720 = vst [vmem:[#allocation2 + $0x40] sm:$0xff] %v1676_v7   ;;  %2080 = vrcp.f32 %v1200_v15  ;;  %v1206_v9 = vpop.xlane.xlu0 %1205  ;;  %v1265_v13 = vmul.f32 %v2071_v60, %v2823_v5 }
 0x3fe   :  { %v1333_v46 = vsel %vm924_vm3, %v1268_v24, %v3040_v10  ;;  %2082 = vrcp.f32 %v1206_v9 }
 0x3ff   :  { %v2073_v52 = vpop.eup %2072  ;;  %v1691_v26 = vpack.c.bf16 %v1333_v46, %v1332_v16  ;;  %v1330_v0 = vsel %vm924_vm3, %v1265_v13, %v3041_v28 }
 0x400   :  { %v2075_v14 = vpop.eup %2074  ;;  %v1266_v3 = vmul.f32 %v2073_v52, %v2830_v47  ;;  %v1208_v11 = vpop.xlane.xlu1 %1207 }
 0x401   :  { %1723 = vst [vmem:[#allocation2 + $0x58] sm:$0xff] %v1691_v26   ;;  %2084 = vrcp.f32 %v1208_v11  ;;  %v1210_v22 = vpop.xlane.xlu0 %1209  ;;  %v1271_v5 = vmul.f32 %v2075_v14, %v2835_v57 }
 0x402   :  { %v1331_v50 = vsel %vm924_vm3, %v1266_v3, %v3042_v39  ;;  %2086 = vrcp.f32 %v1210_v22 }
 0x403   :  { %v2077_v54 = vpop.eup %2076  ;;  %v1686_v41 = vpack.c.bf16 %v1331_v50, %v1330_v0  ;;  %v1336_v42 = vsel %vm924_vm3, %v1271_v5, %v3043_v51 }
 0x404   :  { %v2079_v19 = vpop.eup %2078  ;;  %v1272_v47 = vmul.f32 %v2077_v54, %v2840_v55  ;;  %v1212_v21 = vpop.xlane.xlu1 %1211  ;;  %v3045_v55 = vld [vmem:[#allocation13_spill] sm:$0xff] }
 0x405   :  { %1722 = vst [vmem:[#allocation2 + $0x50] sm:$0xff] %v1686_v41   ;;  %2088 = vrcp.f32 %v1212_v21  ;;  %v1269_v62 = vmul.f32 %v2079_v19, %v2845_v33 }
 0x406   :  { %v1337_v23 = vsel %vm924_vm3, %v1272_v47, %v3044_v31 }
 0x407   :  { %v2081_v57 = vpop.eup %2080  ;;  %v1701_v4 = vpack.c.bf16 %v1337_v23, %v1336_v42  ;;  %v1334_v30 = vsel %vm924_vm3, %v1269_v62, %v3045_v55 }
 0x408   :  { %v2083_v58 = vpop.eup %2082  ;;  %v1270_v48 = vmul.f32 %v2081_v57, %v2850_v59 }
 0x409   :  { %1725 = vst [vmem:[#allocation2 + $0x68] sm:$0xff] %v1701_v4   ;;  %v1273_v53 = vmul.f32 %v2083_v58, %v2855_v27 }
 0x40a   :  { %v1335_v37 = vsel %vm924_vm3, %v1270_v48, %v3046_v18 }
 0x40b   :  { %v2085_v29 = vpop.eup %2084  ;;  %v1696_v2 = vpack.c.bf16 %v1335_v37, %v1334_v30  ;;  %v1338_v59 = vsel %vm924_vm3, %v1273_v53, %v3047_v6 }
 0x40c   :  { %v2087_v36 = vpop.eup %2086  ;;  %v1274_v33 = vmul.f32 %v2085_v29, %v2860_v35 }
 0x40d   :  { %1724 = vst [vmem:[#allocation2 + $0x60] sm:$0xff] %v1696_v2   ;;  %v1275_v63 = vmul.f32 %v2087_v36, %v2865_v40 }
 0x40e   :  { %v1339_v1 = vsel %vm924_vm3, %v1274_v33, %v3048_v12 }
 0x40f   :  { %v2089_v61 = vpop.eup %2088  ;;  %v1706_v49 = vpack.c.bf16 %v1339_v1, %v1338_v59  ;;  %v1340_v35 = vsel %vm924_vm3, %v1275_v63, %v3049_v45 }
 0x410   :  { %v1276_v27 = vmul.f32 %v2089_v61, %v2870_v17 }
 0x411   :  { %1726 = vst [vmem:[#allocation2 + $0x70] sm:$0xff] %v1706_v49  }
 0x412   :  { %v1341_v25 = vsel %vm924_vm3, %v1276_v27, %v3050_v32 }
 0x413   :  { %v1711_v20 = vpack.c.bf16 %v1341_v25, %v1340_v35 }
 0x415   :  { %1727 = vst [vmem:[#allocation2 + $0x78] sm:$0xff] %v1711_v20  }
 0x416   :  { %2101 = shalt.err (!%p2098_p4)
}
 0x417   :  { %s2102_s23 = scalar_lea.hbm %s3020_s7, 2048 }
 0x418   :  { %p2103_p5 = scmp.ne.s32.totalorder %s3020_s7, %s2102_s23  ;;  %p2106_p6 = scmp.lt.u32.totalorder %s2102_s23, %s3020_s7 }
 0x41a   :  { %p2108_p7 = pnand %p2106_p6, %p2103_p5 }
 0x41c   :  { %2111 = shalt.err (!%p2108_p7)
}
 0x41d   :  { %s2115_s27 = smov 64   ;;  %s2116_s28 = smov 4  }
 0x41e   :  { %1513 = dma.vmem_to_hbm [thread:$0]  %s1508_s19, 2048, %s3020_s7, [#allocation3], %s2115_s27, %s2115_s27, %s2116_s28  }
 0x41f   :  { %2112 = dma.done.wait [#allocation3], 2048  }
 0x420   :  { %2113 = vsyncadd [#allocation3], 4294965248 }
 0x421   :  { %1517 = vsyncpa [#allocation3], 1 }

</bundles_post_ra>
